<compile_context>
chip_gen: v7x
topology: tpu7x:2x2x1
jax: 0.10.0
libtpu: 0.0.40
codegen_flags: <defaults>
</compile_context>

<pallas_src>
import jax
import jax.numpy as jnp
from jax.experimental import pallas as pl
from jax.experimental.pallas import tpu as pltpu


# ---------------------------------------------------------------------------
# helpers
# ---------------------------------------------------------------------------

def _round_up(x, m):
    return (x + m - 1) // m * m


def _pad2(a, rows, cols):
    r, c = a.shape
    return jnp.pad(a, ((0, rows - r), (0, cols - c)))


# ---------------------------------------------------------------------------
# kernel: one grid step = one batch tile through the whole MLP + fused heads
# ---------------------------------------------------------------------------

def _modanet_kernel(x_ref,
                    w1_ref, b1_ref,
                    w2_ref, b2_ref,
                    w3_ref, b3_ref,
                    wh_ref, bh_ref,
                    out_ref):
    # All matmuls: bf16 operands, f32 MXU accumulation.
    # Epilogue (bias + ReLU) in bf16: one downcast per layer, result feeds the
    # next matmul directly.
    x = x_ref[...]                                                # (TM, D) bf16

    h = jnp.dot(x, w1_ref[...], preferred_element_type=jnp.float32)
    h = jnp.maximum(h.astype(jnp.bfloat16) + b1_ref[...], 0)     # (TM, 1024) bf16

    h = jnp.dot(h, w2_ref[...], preferred_element_type=jnp.float32)
    h = jnp.maximum(h.astype(jnp.bfloat16) + b2_ref[...], 0)     # (TM, 512) bf16

    h = jnp.dot(h, w3_ref[...], preferred_element_type=jnp.float32)
    h = jnp.maximum(h.astype(jnp.bfloat16) + b3_ref[...], 0)     # (TM, 128) bf16

    # Fused task + domain head (grad-reverse is identity in forward); f32 out.
    out_ref[...] = jnp.dot(h, wh_ref[...],
                           preferred_element_type=jnp.float32) + bh_ref[...]


# ---------------------------------------------------------------------------
# pallas_call wrapper on padded shapes
# ---------------------------------------------------------------------------

@jax.jit
def _modanet_padded(xp, padded_params):
    (w1, b1, w2, b2, w3, b3, wh, bh) = padded_params
    Mp, D = xp.shape
    H1, H2, H3, HO = w1.shape[1], w2.shape[1], w3.shape[1], wh.shape[1]

    # One fat step for small/medium batches; 256-row tiles (>=2 "parallel"
    # steps -> both v7x TensorCores) for large batches.  Weights stay resident
    # every step (constant index maps).
    TM = Mp if Mp <= 512 else 256
    grid = (Mp // TM,)

    flops = 2 * Mp * (D * H1 + H1 * H2 + H2 * H3 + H3 * HO)
    bytes_accessed = (xp.size * 2 + Mp * HO * 4
                      + (w1.size + w2.size + w3.size + wh.size) * 2
                      + (b1.size + b2.size + b3.size) * 2 + bh.size * 4)

    grid_spec = pltpu.PrefetchScalarGridSpec(
        num_scalar_prefetch=0,
        grid=grid,
        in_specs=[
            pl.BlockSpec((TM, D), lambda i: (i, 0)),
            pl.BlockSpec(w1.shape, lambda i: (0, 0)),
            pl.BlockSpec(b1.shape, lambda i: (0, 0)),
            pl.BlockSpec(w2.shape, lambda i: (0, 0)),
            pl.BlockSpec(b2.shape, lambda i: (0, 0)),
            pl.BlockSpec(w3.shape, lambda i: (0, 0)),
            pl.BlockSpec(b3.shape, lambda i: (0, 0)),
            pl.BlockSpec(wh.shape, lambda i: (0, 0)),
            pl.BlockSpec(bh.shape, lambda i: (0, 0)),
        ],
        out_specs=pl.BlockSpec((TM, HO), lambda i: (i, 0)),
    )

    return pl.pallas_call(
        _modanet_kernel,
        out_shape=jax.ShapeDtypeStruct((Mp, HO), jnp.float32),
        grid_spec=grid_spec,
        compiler_params=pltpu.CompilerParams(
            dimension_semantics=("parallel",)),
        cost_estimate=pl.CostEstimate(
            flops=flops, transcendentals=0, bytes_accessed=bytes_accessed),
    )(xp, w1, b1, w2, b2, w3, b3, wh, bh)


# ---------------------------------------------------------------------------
# host-side parameter prep and forward wrapper
# ---------------------------------------------------------------------------

def prepare_params(params):
    """Fuse the two heads, zero-pad hidden dims to lane-aligned widths, bf16.

    Feature dim (d_in) is NOT padded: the kernel uses a full-array block on
    that axis, so any d_in is legal and zero-FLOP padding is avoided.
    """
    (w1, b1, w2, b2, w3, b3, wt, bt, wd, bd) = params
    d_in = w1.shape[0]

    h1_p = _round_up(w1.shape[1], 128)          # 1000 -> 1024
    h2_p = _round_up(w2.shape[1], 128)          # 500  -> 512
    h3_p = _round_up(w3.shape[1], 128)          # 100  -> 128

    wh = jnp.concatenate([wt, wd], axis=1)      # (100, n_classes + 2)
    bh = jnp.concatenate([bt, bd], axis=1)      # (1,   n_classes + 2)
    ho_p = _round_up(wh.shape[1], 128)

    return (
        _pad2(w1, d_in, h1_p).astype(jnp.bfloat16),
        _pad2(b1, 1, h1_p).astype(jnp.bfloat16),
        _pad2(w2, h1_p, h2_p).astype(jnp.bfloat16),
        _pad2(b2, 1, h2_p).astype(jnp.bfloat16),
        _pad2(w3, h2_p, h3_p).astype(jnp.bfloat16),
        _pad2(b3, 1, h3_p).astype(jnp.bfloat16),
        _pad2(wh, h3_p, ho_p).astype(jnp.bfloat16),
        _pad2(bh, 1, ho_p).astype(jnp.float32),
    )


def modanet_forward(Xs, Xt, padded_params, *, n_classes):
    """Mirrors MODANet.forward(Xs, Xt) -> (ys, ds, dt)."""
    xs = list(Xs) + [Xt]
    sizes = [x.shape[0] for x in xs]
    offsets = [0]
    for s in sizes:
        offsets.append(offsets[-1] + s)
    M = offsets[-1]
    D = xs[0].shape[1]

    # All domains -> one bf16 slab.  Row padding is fused into the same
    # concatenate (no separate pad round trip); rows rounded to 16 for clean
    # bf16 (16,128) tiles; feature dim left unpadded.
    Mp = _round_up(M, 16) if M <= 512 else _round_up(M, 256)
    parts = [x.astype(jnp.bfloat16) for x in xs]
    if Mp > M:
        parts.append(jnp.zeros((Mp - M, D), jnp.bfloat16))
    xp = jnp.concatenate(parts, axis=0)

    logits = _modanet_padded(xp, padded_params)          # (Mp, 128) f32

    live = logits[:M, :n_classes + 2]                    # one lane slice
    task = live[:, :n_classes]
    dom = live[:, n_classes:]

    n_src = len(Xs)
    ys = [task[offsets[i]:offsets[i + 1]] for i in range(n_src)]
    ds = [dom[offsets[i]:offsets[i + 1]] for i in range(n_src)]
    dt = dom[offsets[n_src]:offsets[n_src + 1]]
    return ys, ds, dt


# ---------------------------------------------------------------------------
# init + pure-JAX reference
# ---------------------------------------------------------------------------

def init_linear(key, fan_in, fan_out):
    """PyTorch-style Linear init; returns W [in,out], b [1,out] (f32)."""
    kw, kb = jax.random.split(key)
    bound = 1.0 / jnp.sqrt(jnp.float32(fan_in))
    w = jax.random.uniform(kw, (fan_in, fan_out), jnp.float32, -bound, bound)
    b = jax.random.uniform(kb, (1, fan_out), jnp.float32, -bound, bound)
    return w, b


def init_params(key, input_dim, n_classes):
    k1, k2, k3, kt, kd = jax.random.split(key, 5)
    w1, b1 = init_linear(k1, input_dim, 1000)
    w2, b2 = init_linear(k2, 1000, 500)
    w3, b3 = init_linear(k3, 500, 100)
    wt, bt = init_linear(kt, 100, n_classes)
    wd, bd = init_linear(kd, 100, 2)
    return (w1, b1, w2, b2, w3, b3, wt, bt, wd, bd)


def _reference_forward(Xs, Xt, params):
    (w1, b1, w2, b2, w3, b3, wt, bt, wd, bd) = params

    def feat(x):
        h = jnp.maximum(x @ w1 + b1, 0.0)
        h = jnp.maximum(h @ w2 + b2, 0.0)
        return jnp.maximum(h @ w3 + b3, 0.0)

    ys = [feat(x) @ wt + bt for x in Xs]
    ds = [feat(x) @ wd + bd for x in Xs]
    dt = feat(Xt) @ wd + bd
    return ys, ds, dt


# ---------------------------------------------------------------------------
# main
# ---------------------------------------------------------------------------

if __name__ == "__main__":
    # TODO(synk): dropout / gradient-reversal are forward-identity only; a
    # training-time custom VJP is out of scope for this forward kernel.
    input_dim = 32
    n_classes = 5
    batch = 8
    n_sources = 2

    key = jax.random.PRNGKey(0)
    kparams, *kx = jax.random.split(key, 2 + n_sources)

    params = init_params(kparams, input_dim, n_classes)
    padded_params = prepare_params(params)

    Xs = [jax.random.normal(kx[i], (batch, input_dim), jnp.float32)
          for i in range(n_sources)]
    Xt = jax.random.normal(kx[n_sources], (batch, input_dim), jnp.float32)

    ys, ds, dt = modanet_forward(Xs, Xt, padded_params, n_classes=n_classes)
    jax.block_until_ready(dt)

    # Check against the pure-f32 reference (bf16 weights + bf16 activation
    # epilogue, f32 MXU accumulation -> relaxed tolerance).
    ys_ref, ds_ref, dt_ref = _reference_forward(Xs, Xt, params)
    for a, b in zip(ys, ys_ref):
        assert jnp.allclose(a, b, atol=2e-2, rtol=2e-2)
    for a, b in zip(ds, ds_ref):
        assert jnp.allclose(a, b, atol=2e-2, rtol=2e-2)
    assert jnp.allclose(dt, dt_ref, atol=2e-2, rtol=2e-2)

    print("KERNEL_OK")
</pallas_src>

<mosaic_0001>
module attributes {stable_mosaic.version = 11 : i64} {
  func.func @_modanet_kernel(%arg0: i32, %arg1: memref<32x32xbf16, #tpu.memory_space<vmem>>, %arg2: memref<32x1024xbf16, #tpu.memory_space<vmem>>, %arg3: memref<1x1024xbf16, #tpu.memory_space<vmem>>, %arg4: memref<1024x512xbf16, #tpu.memory_space<vmem>>, %arg5: memref<1x512xbf16, #tpu.memory_space<vmem>>, %arg6: memref<512x128xbf16, #tpu.memory_space<vmem>>, %arg7: memref<1x128xbf16, #tpu.memory_space<vmem>>, %arg8: memref<128x128xbf16, #tpu.memory_space<vmem>>, %arg9: memref<1x128xf32, #tpu.memory_space<vmem>>, %arg10: memref<32x128xf32, #tpu.memory_space<vmem>>) attributes {dimension_semantics = [#tpu.dimension_semantics<parallel>], iteration_bounds = array<i64: 1>, scalar_prefetch = 0 : i64, scratch_operands = 0 : i64, tpu.core_type = #tpu.core_type<tc>, window_params = [{transform_indices = @transform_0, window_bounds = array<i64: 32, 32>}, {pipeline_mode = #tpu.pipeline_mode<synchronous>, transform_indices = @transform_1, window_bounds = array<i64: 32, 1024>}, {pipeline_mode = #tpu.pipeline_mode<synchronous>, transform_indices = @transform_2, window_bounds = array<i64: 1, 1024>}, {pipeline_mode = #tpu.pipeline_mode<synchronous>, transform_indices = @transform_3, window_bounds = array<i64: 1024, 512>}, {pipeline_mode = #tpu.pipeline_mode<synchronous>, transform_indices = @transform_4, window_bounds = array<i64: 1, 512>}, {pipeline_mode = #tpu.pipeline_mode<synchronous>, transform_indices = @transform_5, window_bounds = array<i64: 512, 128>}, {pipeline_mode = #tpu.pipeline_mode<synchronous>, transform_indices = @transform_6, window_bounds = array<i64: 1, 128>}, {pipeline_mode = #tpu.pipeline_mode<synchronous>, transform_indices = @transform_7, window_bounds = array<i64: 128, 128>}, {pipeline_mode = #tpu.pipeline_mode<synchronous>, transform_indices = @transform_8, window_bounds = array<i64: 1, 128>}, {transform_indices = @transform_9, window_bounds = array<i64: 32, 128>}]} {
    %c0 = arith.constant 0 : index
    %c0_0 = arith.constant 0 : index
    %0 = vector.load %arg1[%c0, %c0_0] : memref<32x32xbf16, #tpu.memory_space<vmem>>, vector<32x32xbf16>
    %c0_1 = arith.constant 0 : index
    %c0_2 = arith.constant 0 : index
    %1 = vector.load %arg2[%c0_1, %c0_2] : memref<32x1024xbf16, #tpu.memory_space<vmem>>, vector<32x1024xbf16>
    %cst = arith.constant dense<0.000000e+00> : vector<32x1024xf32>
    %2 = tpu.matmul %0, %1, %cst {dimension_numbers = #tpu.dot_dimension_numbers<[1], [0], [0], [1], [0, 0, 1, 1], [], []>} : vector<32x32xbf16>, vector<32x1024xbf16>, vector<32x1024xf32> -> vector<32x1024xf32>
    %3 = arith.truncf %2 : vector<32x1024xf32> to vector<32x1024xbf16>
    %c0_3 = arith.constant 0 : index
    %c0_4 = arith.constant 0 : index
    %4 = vector.load %arg3[%c0_3, %c0_4] : memref<1x1024xbf16, #tpu.memory_space<vmem>>, vector<1x1024xbf16>
    %5 = vector.broadcast %4 : vector<1x1024xbf16> to vector<32x1024xbf16>
    %6 = arith.addf %3, %5 : vector<32x1024xbf16>
    %cst_5 = arith.constant 0.000000e+00 : bf16
    %7 = vector.broadcast %cst_5 : bf16 to vector<32x1024xbf16>
    %8 = arith.maximumf %6, %7 : vector<32x1024xbf16>
    %c0_6 = arith.constant 0 : index
    %c0_7 = arith.constant 0 : index
    %9 = vector.load %arg4[%c0_6, %c0_7] : memref<1024x512xbf16, #tpu.memory_space<vmem>>, vector<1024x512xbf16>
    %cst_8 = arith.constant dense<0.000000e+00> : vector<32x512xf32>
    %10 = tpu.matmul %8, %9, %cst_8 {dimension_numbers = #tpu.dot_dimension_numbers<[1], [0], [0], [1], [0, 0, 1, 1], [], []>} : vector<32x1024xbf16>, vector<1024x512xbf16>, vector<32x512xf32> -> vector<32x512xf32>
    %11 = arith.truncf %10 : vector<32x512xf32> to vector<32x512xbf16>
    %c0_9 = arith.constant 0 : index
    %c0_10 = arith.constant 0 : index
    %12 = vector.load %arg5[%c0_9, %c0_10] : memref<1x512xbf16, #tpu.memory_space<vmem>>, vector<1x512xbf16>
    %13 = vector.broadcast %12 : vector<1x512xbf16> to vector<32x512xbf16>
    %14 = arith.addf %11, %13 : vector<32x512xbf16>
    %cst_11 = arith.constant 0.000000e+00 : bf16
    %15 = vector.broadcast %cst_11 : bf16 to vector<32x512xbf16>
    %16 = arith.maximumf %14, %15 : vector<32x512xbf16>
    %c0_12 = arith.constant 0 : index
    %c0_13 = arith.constant 0 : index
    %17 = vector.load %arg6[%c0_12, %c0_13] : memref<512x128xbf16, #tpu.memory_space<vmem>>, vector<512x128xbf16>
    %cst_14 = arith.constant dense<0.000000e+00> : vector<32x128xf32>
    %18 = tpu.matmul %16, %17, %cst_14 {dimension_numbers = #tpu.dot_dimension_numbers<[1], [0], [0], [1], [0, 0, 1, 1], [], []>} : vector<32x512xbf16>, vector<512x128xbf16>, vector<32x128xf32> -> vector<32x128xf32>
    %19 = arith.truncf %18 : vector<32x128xf32> to vector<32x128xbf16>
    %c0_15 = arith.constant 0 : index
    %c0_16 = arith.constant 0 : index
    %20 = vector.load %arg7[%c0_15, %c0_16] : memref<1x128xbf16, #tpu.memory_space<vmem>>, vector<1x128xbf16>
    %21 = vector.broadcast %20 : vector<1x128xbf16> to vector<32x128xbf16>
    %22 = arith.addf %19, %21 : vector<32x128xbf16>
    %cst_17 = arith.constant 0.000000e+00 : bf16
    %23 = vector.broadcast %cst_17 : bf16 to vector<32x128xbf16>
    %24 = arith.maximumf %22, %23 : vector<32x128xbf16>
    %c0_18 = arith.constant 0 : index
    %c0_19 = arith.constant 0 : index
    %25 = vector.load %arg8[%c0_18, %c0_19] : memref<128x128xbf16, #tpu.memory_space<vmem>>, vector<128x128xbf16>
    %cst_20 = arith.constant dense<0.000000e+00> : vector<32x128xf32>
    %26 = tpu.matmul %24, %25, %cst_20 {dimension_numbers = #tpu.dot_dimension_numbers<[1], [0], [0], [1], [0, 0, 1, 1], [], []>} : vector<32x128xbf16>, vector<128x128xbf16>, vector<32x128xf32> -> vector<32x128xf32>
    %c0_21 = arith.constant 0 : index
    %c0_22 = arith.constant 0 : index
    %27 = vector.load %arg9[%c0_21, %c0_22] : memref<1x128xf32, #tpu.memory_space<vmem>>, vector<1x128xf32>
    %28 = vector.broadcast %27 : vector<1x128xf32> to vector<32x128xf32>
    %29 = arith.addf %26, %28 : vector<32x128xf32>
    %c0_23 = arith.constant 0 : index
    %c0_24 = arith.constant 0 : index
    %30 = vector.load %arg10[%c0_23, %c0_24] : memref<32x128xf32, #tpu.memory_space<vmem>>, vector<32x128xf32>
    tpu.vector_store %arg10[%c0_23, %c0_24], %29 {strides = array<i32>} : memref<32x128xf32, #tpu.memory_space<vmem>>, vector<32x128xf32>,
    return
  }
  func.func @transform_0(%arg0: i32) -> (i32, i32) {
    %c0_i32 = arith.constant 0 : i32
    %c0_i32_0 = arith.constant 0 : i32
    return %arg0, %c0_i32 : i32, i32
  }
  func.func @transform_1(%arg0: i32) -> (i32, i32) {
    %c0_i32 = arith.constant 0 : i32
    %c0_i32_0 = arith.constant 0 : i32
    %c0_i32_1 = arith.constant 0 : i32
    return %c0_i32, %c0_i32_0 : i32, i32
  }
  func.func @transform_2(%arg0: i32) -> (i32, i32) {
    %c0_i32 = arith.constant 0 : i32
    %c0_i32_0 = arith.constant 0 : i32
    %c0_i32_1 = arith.constant 0 : i32
    return %c0_i32, %c0_i32_0 : i32, i32
  }
  func.func @transform_3(%arg0: i32) -> (i32, i32) {
    %c0_i32 = arith.constant 0 : i32
    %c0_i32_0 = arith.constant 0 : i32
    %c0_i32_1 = arith.constant 0 : i32
    return %c0_i32, %c0_i32_0 : i32, i32
  }
  func.func @transform_4(%arg0: i32) -> (i32, i32) {
    %c0_i32 = arith.constant 0 : i32
    %c0_i32_0 = arith.constant 0 : i32
    %c0_i32_1 = arith.constant 0 : i32
    return %c0_i32, %c0_i32_0 : i32, i32
  }
  func.func @transform_5(%arg0: i32) -> (i32, i32) {
    %c0_i32 = arith.constant 0 : i32
    %c0_i32_0 = arith.constant 0 : i32
    %c0_i32_1 = arith.constant 0 : i32
    return %c0_i32, %c0_i32_0 : i32, i32
  }
  func.func @transform_6(%arg0: i32) -> (i32, i32) {
    %c0_i32 = arith.constant 0 : i32
    %c0_i32_0 = arith.constant 0 : i32
    %c0_i32_1 = arith.constant 0 : i32
    return %c0_i32, %c0_i32_0 : i32, i32
  }
  func.func @transform_7(%arg0: i32) -> (i32, i32) {
    %c0_i32 = arith.constant 0 : i32
    %c0_i32_0 = arith.constant 0 : i32
    %c0_i32_1 = arith.constant 0 : i32
    return %c0_i32, %c0_i32_0 : i32, i32
  }
  func.func @transform_8(%arg0: i32) -> (i32, i32) {
    %c0_i32 = arith.constant 0 : i32
    %c0_i32_0 = arith.constant 0 : i32
    %c0_i32_1 = arith.constant 0 : i32
    return %c0_i32, %c0_i32_0 : i32, i32
  }
  func.func @transform_9(%arg0: i32) -> (i32, i32) {
    %c0_i32 = arith.constant 0 : i32
    %c0_i32_0 = arith.constant 0 : i32
    return %arg0, %c0_i32 : i32, i32
  }
}

</mosaic_0001>

<bundles_post_ra>
// kernel: _modanet_padded.1
= control target key start
LH: loop header
LB: loop body
LE: loop exit
PB: predicated region body
PF: predicated region fallthrough
CT: control target
= control target key end

     0   :  { %14 = vsyncpa [#allocation3], 0  ;;  %s4601_s0 = inlined_call_operand.hbm [shape: bf16[32,32], index: 0, kind: input, shape index: {}]   ;;  %s4602_s1 = inlined_call_operand.hbm [shape: bf16[32,1024], index: 1, kind: input, shape index: {}]   ;;  %s4603_s2 = inlined_call_operand.hbm [shape: bf16[1,1024], index: 2, kind: input, shape index: {}]   ;;  %s4604_s3 = inlined_call_operand.hbm [shape: bf16[1024,512], index: 3, kind: input, shape index: {}]   ;;  %s4605_s4 = inlined_call_operand.vmem [shape: bf16[1,512], index: 4, kind: input, shape index: {}]   ;;  %s4606_s5 = inlined_call_operand.hbm [shape: bf16[512,128], index: 5, kind: input, shape index: {}]   ;;  %s4607_s6 = inlined_call_operand.vmem [shape: bf16[1,128], index: 6, kind: input, shape index: {}]   ;;  %s4608_s7 = inlined_call_operand.hbm [shape: bf16[128,128], index: 7, kind: input, shape index: {}]   ;;  %s4609_s8 = inlined_call_operand.vmem [shape: f32[1,128], index: 8, kind: input, shape index: {}]   ;;  %s4610_s9 = inlined_call_operand.hbm [shape: f32[32,128], index: 9, kind: output, shape index: {}]  }
   0x1   :  { %15 = vsyncpa [#allocation6], 0 }
   0x2   :  { %16 = vsyncpa [#allocation9], 0 }
   0x3   :  { %17 = vsyncpa [#allocation12], 0 }
   0x4   :  { %18 = vsyncpa [#allocation4], 0  ;;  %s4214_s30 = smov [#allocation5]   ;;  %s4050_s13 = scalar_lea.hbm %s4602_s1, 2048 }
   0x5   :  { %s36_s10 = sshll.u32 %s4214_s30, 4  ;;  %p4051_p0 = scmp.ne.s32.totalorder %s4602_s1, %s4050_s13  ;;  %s37_s10 = int_to_ptr.vmem [resolvable:$true] %s36_s10 }
   0x6   :  { %p4054_p1 = scmp.lt.u32.totalorder %s4050_s13, %s4602_s1 }
   0x8   :  { %p4056_p2 = pnand %p4054_p1, %p4051_p0 }
   0xa   :  { %4059 = shalt.err (!%p4056_p2)
}
   0xb   :  { %s4060_s18 = scalar_lea.vmem %s37_s10, 2048  ;;  %p4065_p4 = scmp.lt.s32.totalorder %s37_s10, %s37_s10 }
   0xc   :  { %p4061_p3 = scmp.ne.s32.totalorder %s37_s10, %s4060_s18  ;;  %p4066_p5 = scmp.lt.s32.totalorder %s4060_s18, %s4060_s18 }
   0xe   :  { %p4067_p6 = por %p4066_p5, %p4065_p4 }
  0x10   :  { %p4068_p7 = pnand %p4067_p6, %p4061_p3 }
  0x12   :  { %4071 = shalt.err (!%p4068_p7)
}
  0x13   :  { %s4215_s19 = smov 512   ;;  %s4216_s20 = smov 32  }
  0x14   :  { %42 = dma.hbm_to_vmem [thread:$0]  %s4602_s1, 2048, %s37_s10, [#allocation6], %s4215_s19, %s4215_s19, %s4216_s20  }
  0x15   :  { %s4217_s23 = smov [#allocation8]   ;;  %s4072_s27 = scalar_lea.hbm %s4604_s3, 32768 }
  0x16   :  { %s58_s24 = sshll.u32 %s4217_s23, 4  ;;  %p4073_p8 = scmp.ne.s32.totalorder %s4604_s3, %s4072_s27  ;;  %s59_s24 = int_to_ptr.vmem [resolvable:$true] %s58_s24 }
  0x17   :  { %p4076_p9 = scmp.lt.u32.totalorder %s4072_s27, %s4604_s3 }
  0x19   :  { %p4078_p10 = pnand %p4076_p9, %p4073_p8 }
  0x1b   :  { %4081 = shalt.err (!%p4078_p10)
}
  0x1c   :  { %s4082_s12 = scalar_lea.vmem %s59_s24, 32768  ;;  %p4087_p12 = scmp.lt.s32.totalorder %s59_s24, %s59_s24 }
  0x1d   :  { %p4083_p11 = scmp.ne.s32.totalorder %s59_s24, %s4082_s12  ;;  %p4088_p13 = scmp.lt.s32.totalorder %s4082_s12, %s4082_s12 }
  0x1f   :  { %p4089_p0 = por %p4088_p13, %p4087_p12 }
  0x21   :  { %p4090_p1 = pnand %p4089_p0, %p4083_p11 }
  0x23   :  { %4093 = shalt.err (!%p4090_p1)
}
  0x24   :  { %s4218_s1 = smov 256   ;;  %s4219_s10 = smov 16  }
  0x25   :  { %64 = dma.hbm_to_vmem [thread:$0]  %s4604_s3, 32768, %s59_s24, [#allocation9], %s4218_s1, %s4218_s1, %s4219_s10  }
  0x26   :  { %s4220_s15 = smov [#allocation2]   ;;  %s4094_s19 = scalar_lea.hbm %s4601_s0, 256 }
  0x27   :  { %s24_s16 = sshll.u32 %s4220_s15, 4  ;;  %p4095_p2 = scmp.ne.s32.totalorder %s4601_s0, %s4094_s19  ;;  %s25_s16 = int_to_ptr.vmem [resolvable:$true] %s24_s16 }
  0x28   :  { %p4098_p3 = scmp.lt.u32.totalorder %s4094_s19, %s4601_s0 }
  0x2a   :  { %p4100_p4 = pnand %p4098_p3, %p4095_p2 }
  0x2c   :  { %4103 = shalt.err (!%p4100_p4)
}
  0x2d   :  { %s4104_s25 = scalar_lea.vmem %s25_s16, 256  ;;  %p4109_p6 = scmp.lt.s32.totalorder %s25_s16, %s25_s16 }
  0x2e   :  { %p4105_p5 = scmp.ne.s32.totalorder %s25_s16, %s4104_s25  ;;  %p4110_p7 = scmp.lt.s32.totalorder %s4104_s25, %s4104_s25 }
  0x30   :  { %p4111_p8 = por %p4110_p7, %p4109_p6 }
  0x32   :  { %p4112_p9 = pnand %p4111_p8, %p4105_p5 }
  0x34   :  { %4115 = shalt.err (!%p4112_p9)
}
  0x35   :  { %s4221_s3 = smov 64   ;;  %s4222_s24 = smov 4  }
  0x36   :  { %30 = dma.hbm_to_vmem [thread:$0]  %s4601_s0, 256, %s25_s16, [#allocation3], %s4221_s3, %s4221_s3, %s4222_s24  }
  0x37   :  { %s4223_s28 = smov [#allocation7]   ;;  %s4224_s30 = smov [#allocation10]  }
  0x38   :  { %s49_s29 = sshll.u32 %s4223_s28, 4  ;;  %s72_s11 = sshll.u32 %s4224_s30, 4  ;;  %s50_s29 = int_to_ptr.vmem [resolvable:$true] %s49_s29  ;;  %s73_s11 = int_to_ptr.vmem [resolvable:$true] %s72_s11 }
  0x39   :  { %s4116_s10 = scalar_lea.hbm %s4603_s2, 128 }
  0x3a   :  { %p4117_p10 = scmp.ne.s32.totalorder %s4603_s2, %s4116_s10  ;;  %p4120_p11 = scmp.lt.u32.totalorder %s4116_s10, %s4603_s2 }
  0x3c   :  { %p4122_p12 = pnand %p4120_p11, %p4117_p10 }
  0x3e   :  { %4125 = shalt.err (!%p4122_p12)
}
  0x3f   :  { %s4126_s0 = scalar_lea.vmem %s50_s29, 128  ;;  %p4131_p0 = scmp.lt.s32.totalorder %s50_s29, %s50_s29 }
  0x40   :  { %p4127_p13 = scmp.ne.s32.totalorder %s50_s29, %s4126_s0  ;;  %p4132_p1 = scmp.lt.s32.totalorder %s4126_s0, %s4126_s0 }
  0x42   :  { %p4133_p2 = por %p4132_p1, %p4131_p0 }
  0x44   :  { %p4134_p3 = pnand %p4133_p2, %p4127_p13 }
  0x46   :  { %4137 = shalt.err (!%p4134_p3)
}
  0x47   :  { %52 = dma.hbm_to_vmem [thread:$0]  %s4603_s2, 128, %s50_s29, [#allocation6]  }
  0x48   :  { %s4138_s21 = scalar_lea.hbm %s4606_s5, 4096 }
  0x49   :  { %p4139_p4 = scmp.ne.s32.totalorder %s4606_s5, %s4138_s21  ;;  %p4142_p5 = scmp.lt.u32.totalorder %s4138_s21, %s4606_s5 }
  0x4b   :  { %p4144_p6 = pnand %p4142_p5, %p4139_p4 }
  0x4d   :  { %4147 = shalt.err (!%p4144_p6)
}
  0x4e   :  { %s4148_s27 = scalar_lea.vmem %s73_s11, 4096  ;;  %p4153_p8 = scmp.lt.s32.totalorder %s73_s11, %s73_s11 }
  0x4f   :  { %p4149_p7 = scmp.ne.s32.totalorder %s73_s11, %s4148_s27  ;;  %p4154_p9 = scmp.lt.s32.totalorder %s4148_s27, %s4148_s27 }
  0x51   :  { %p4155_p10 = por %p4154_p9, %p4153_p8 }
  0x53   :  { %p4156_p11 = pnand %p4155_p10, %p4149_p7 }
  0x55   :  { %4159 = shalt.err (!%p4156_p11)
}
  0x56   :  { %78 = dma.hbm_to_vmem [thread:$0]  %s4606_s5, 4096, %s73_s11, [#allocation9], %s4221_s3, %s4221_s3, %s4222_s24  }
  0x57   :  { %s4225_s29 = smov [#allocation11]   ;;  %s4160_s10 = scalar_lea.hbm %s4608_s7, 1024 }
  0x58   :  { %s86_s30 = sshll.u32 %s4225_s29, 4  ;;  %p4161_p12 = scmp.ne.s32.totalorder %s4608_s7, %s4160_s10  ;;  %s87_s30 = int_to_ptr.vmem [resolvable:$true] %s86_s30 }
  0x59   :  { %p4164_p13 = scmp.lt.u32.totalorder %s4160_s10, %s4608_s7 }
  0x5b   :  { %p4166_p0 = pnand %p4164_p13, %p4161_p12 }
  0x5d   :  { %4169 = shalt.err (!%p4166_p0)
}
  0x5e   :  { %s4170_s0 = scalar_lea.vmem %s87_s30, 1024  ;;  %p4175_p2 = scmp.lt.s32.totalorder %s87_s30, %s87_s30 }
  0x5f   :  { %p4171_p1 = scmp.ne.s32.totalorder %s87_s30, %s4170_s0  ;;  %p4176_p3 = scmp.lt.s32.totalorder %s4170_s0, %s4170_s0 }
  0x61   :  { %p4177_p4 = por %p4176_p3, %p4175_p2 }
  0x63   :  { %p4178_p5 = pnand %p4177_p4, %p4171_p1 }
  0x65   :  { %4181 = shalt.err (!%p4178_p5)
}
  0x66   :  { %92 = dma.hbm_to_vmem [thread:$0]  %s4608_s7, 1024, %s87_s30, [#allocation12], %s4221_s3, %s4221_s3, %s4222_s24  }
  0x67   :  { %4204 = dma.done.wait [#allocation3], 256  }
  0x68   :  { %4205 = vsyncadd [#allocation3], 4294967040 }
  0x69   :  { %4206 = dma.done.wait [#allocation6], 2176  }
  0x6a   :  { %4207 = vsyncadd [#allocation6], 4294965120 }
  0x6b   :  { %4208 = dma.done.wait [#allocation9], 36864  }
  0x6c   :  { %4209 = vsyncadd [#allocation9], 4294930432 }
  0x6d   :  { %4210 = dma.done.wait [#allocation12], 1024  }
  0x6e   :  { %4211 = vsyncadd [#allocation12], 4294966272  ;;  %v4226_v0 = vmov 0   ;;  %v118_v1 = vld [vmem:[#allocation5] sm:$0xff]  ;;  %v119_v8 = vld [vmem:[#allocation5 + $0x8] sm:$0xff]  ;;  %vm224_vm0 = vcmask 261120  }
  0x6f   :  { %263 = vmatprep.mubr.bf16.mxu1 %v4226_v0  ;;  %369 = vmatprep.mubr.bf16.mxu0 %v4226_v0  ;;  %v122_v2 = vld [vmem:[#allocation5 + $0x20] sm:$0xff]  ;;  %v123_v9 = vld [vmem:[#allocation5 + $0x28] sm:$0xff]  ;;  %v120_v11 = vld [vmem:[#allocation5 + $0x10] sm:$0xff]  ;;  %s4228_s18 = smov [#allocation13]  }
  0x70   :  { %v126_v3 = vld [vmem:[#allocation5 + $0x40] sm:$0xff]  ;;  %v3151_v4 = vcombine.high %v118_v1, %v122_v2  ;;  %v3150_v5 = vcombine.low %v118_v1, %v122_v2  ;;  %v3153_v12 = vcombine.high %v119_v8, %v123_v9  ;;  %v124_v13 = vld [vmem:[#allocation5 + $0x30] sm:$0xff]  ;;  %v127_v16 = vld [vmem:[#allocation5 + $0x48] sm:$0xff]  ;;  %v3152_v22 = vcombine.low %v119_v8, %v123_v9  ;;  %s3133_s19 = sshll.u32 %s4228_s18, 4  ;;  %s3134_s19 = int_to_ptr.vmem [resolvable:$true] %s3133_s19 }
  0x71   :  { %v130_v6 = vld [vmem:[#allocation5 + $0x60] sm:$0xff]  ;;  %v128_v14 = vld [vmem:[#allocation5 + $0x50] sm:$0xff]  ;;  %v131_v17 = vld [vmem:[#allocation5 + $0x68] sm:$0xff]  ;;  %v3155_v18 = vcombine.high %v120_v11, %v124_v13  ;;  %v3154_v19 = vcombine.low %v120_v11, %v124_v13  ;;  %s4182_s20 = scalar_lea.vmem %s3134_s19, 512  ;;  %p4187_p7 = scmp.lt.s32.totalorder %s3134_s19, %s3134_s19 }
  0x72   :  { %v3159_v7 = vcombine.high %v126_v3, %v130_v6  ;;  %231 = vmatprep.subr.bf16.mxu1 %v3151_v4  ;;  %v3158_v10 = vcombine.low %v126_v3, %v130_v6  ;;  %v132_v15 = vld [vmem:[#allocation5 + $0x70] sm:$0xff]  ;;  %v3161_v23 = vcombine.high %v127_v16, %v131_v17  ;;  %v121_v25 = vld [vmem:[#allocation5 + $0x18] sm:$0xff]  ;;  %v3160_v28 = vcombine.low %v127_v16, %v131_v17  ;;  %p4183_p6 = scmp.ne.s32.totalorder %s3134_s19, %s4182_s20  ;;  %p4188_p8 = scmp.lt.s32.totalorder %s4182_s20, %s4182_s20 }
  0x73   :  { %232 = vmatpush1.bf16.msra.mxu1 %v3150_v5  ;;  %v3163_v20 = vcombine.high %v128_v14, %v132_v15  ;;  %v4364_v21 = vld [vmem:[#allocation2] sm:$0xff]   ;;  %337 = vmatprep.subr.bf16.mxu0 %v3155_v18  ;;  %v3162_v24 = vcombine.low %v128_v14, %v132_v15  ;;  %v125_v26 = vld [vmem:[#allocation5 + $0x38] sm:$0xff] }
  0x74   :  { %233 = vmatprep.subr.bf16.mxu1 %v3159_v7  ;;  %338 = vmatpush1.bf16.msra.mxu0 %v3154_v19  ;;  %v3627_v27 = vld [vmem:[#allocation8 + $0x4] ss:$16 sps:$4 sm:$0xff]   ;;  %v3157_v30 = vcombine.high %v121_v25, %v125_v26  ;;  %v3625_v31 = vld [vmem:[#allocation8] ss:$16 sps:$4 sm:$0xff]   ;;  %v3156_v39 = vcombine.low %v121_v25, %v125_v26  ;;  %v3630_v44 = vld [vmem:[#allocation8 + $0xc] ss:$16 sps:$4 sm:$0xff]   ;;  %p4189_p9 = por %p4188_p8, %p4187_p7 }
  0x75   :  { %339 = vmatprep.subr.bf16.mxu0 %v3163_v20  ;;  %v4369_v29 = vld [vmem:[#allocation2 + $0x8] sm:$0xff]   ;;  %v3628_v51 = vld [vmem:[#allocation8 + $0x8] ss:$16 sps:$4 sm:$0xff]   ;;  %v3636_v52 = vld [vmem:[#allocation8 + $0x2c] ss:$16 sps:$4 sm:$0xff]  }
  0x76   :  { %v3633_v32 = vld [vmem:[#allocation8 + $0x24] ss:$16 sps:$4 sm:$0xff]   ;;  %v3631_v33 = vld [vmem:[#allocation8 + $0x20] ss:$16 sps:$4 sm:$0xff]   ;;  %v3634_v53 = vld [vmem:[#allocation8 + $0x28] ss:$16 sps:$4 sm:$0xff]   ;;  %p4190_p10 = pnand %p4189_p9, %p4183_p6 }
  0x77   :  { %234 = vmatpush1.bf16.msra.mxu1 %v3158_v10  ;;  %v3639_v34 = vld [vmem:[#allocation8 + $0x44] ss:$16 sps:$4 sm:$0xff]   ;;  %v3637_v37 = vld [vmem:[#allocation8 + $0x40] ss:$16 sps:$4 sm:$0xff]   ;;  %v3642_v56 = vld [vmem:[#allocation8 + $0x4c] ss:$16 sps:$4 sm:$0xff]  }
  0x78   :  { %284 = vmatprep.subr.bf16.mxu1 %v3153_v12  ;;  %340 = vmatpush1.bf16.msra.mxu0 %v3162_v24  ;;  %v129_v35 = vld [vmem:[#allocation5 + $0x58] sm:$0xff]  ;;  %v3640_v59 = vld [vmem:[#allocation8 + $0x48] ss:$16 sps:$4 sm:$0xff]   ;;  %v3648_v60 = vld [vmem:[#allocation8 + $0x6c] ss:$16 sps:$4 sm:$0xff]  }
  0x79   :  { %2134 = vmatprep.subr.bf16.mxu0 %v3627_v27  ;;  %v133_v36 = vld [vmem:[#allocation5 + $0x78] sm:$0xff]  ;;  %v3646_v63 = vld [vmem:[#allocation8 + $0x68] ss:$16 sps:$4 sm:$0xff]   ;;  %v3654_v1 = vld [vmem:[#allocation8 + $0x8c] ss:$16 sps:$4 sm:$0xff]  }
  0x7a   :  { %3166 = vmatmul.mubr.msk.bf16.vlgmr.msra.gmra.mrb[0].mxu1 %vm224_vm0, %v4364_v21  ;;  %v3645_v38 = vld [vmem:[#allocation8 + $0x64] ss:$16 sps:$4 sm:$0xff]   ;;  %v3165_v40 = vcombine.high %v129_v35, %v133_v36  ;;  %v3643_v41 = vld [vmem:[#allocation8 + $0x60] ss:$16 sps:$4 sm:$0xff]   ;;  %v3164_v43 = vcombine.low %v129_v35, %v133_v36  ;;  %v3652_v4 = vld [vmem:[#allocation8 + $0x88] ss:$16 sps:$4 sm:$0xff]  }
  0x7b   :  { %285 = vmatpush1.bf16.msra.mxu1 %v3152_v22  ;;  %273 = vmatprep.mubr.bf16.mxu1 %v4226_v0  ;;  %v3651_v42 = vld [vmem:[#allocation8 + $0x84] ss:$16 sps:$4 sm:$0xff]   ;;  %v3649_v45 = vld [vmem:[#allocation8 + $0x80] ss:$16 sps:$4 sm:$0xff]   ;;  %v3660_v5 = vld [vmem:[#allocation8 + $0xac] ss:$16 sps:$4 sm:$0xff]  }
  0x7c   :  { %286 = vmatprep.subr.bf16.mxu1 %v3161_v23  ;;  %3170 = vmatmul.mubr.msk.bf16.vlgmr.msra.gmra.mrb[0].mxu0 %vm224_vm0, %v4364_v21  ;;  %v3657_v46 = vld [vmem:[#allocation8 + $0xa4] ss:$16 sps:$4 sm:$0xff]   ;;  %v3655_v47 = vld [vmem:[#allocation8 + $0xa0] ss:$16 sps:$4 sm:$0xff]   ;;  %v3658_v8 = vld [vmem:[#allocation8 + $0xa8] ss:$16 sps:$4 sm:$0xff]  }
  0x7d   :  { %379 = vmatprep.mubr.bf16.mxu0 %v4226_v0  ;;  %2135 = vmatpush1.bf16.msra.mxu0 %v3625_v31  ;;  %v3663_v48 = vld [vmem:[#allocation8 + $0xc4] ss:$16 sps:$4 sm:$0xff]   ;;  %v3661_v49 = vld [vmem:[#allocation8 + $0xc0] ss:$16 sps:$4 sm:$0xff]   ;;  %v3666_v9 = vld [vmem:[#allocation8 + $0xcc] ss:$16 sps:$4 sm:$0xff]  }
  0x7e   :  { %2136 = vmatprep.subr.bf16.mxu0 %v3633_v32  ;;  %v3669_v50 = vld [vmem:[#allocation8 + $0xe4] ss:$16 sps:$4 sm:$0xff]   ;;  %v3667_v54 = vld [vmem:[#allocation8 + $0xe0] ss:$16 sps:$4 sm:$0xff]   ;;  %v3664_v12 = vld [vmem:[#allocation8 + $0xc8] ss:$16 sps:$4 sm:$0xff]  }
  0x7f   :  { %287 = vmatpush1.bf16.msra.mxu1 %v3160_v28  ;;  %v3675_v55 = vld [vmem:[#allocation8 + $0x104] ss:$16 sps:$4 sm:$0xff]   ;;  %v3673_v57 = vld [vmem:[#allocation8 + $0x100] ss:$16 sps:$4 sm:$0xff]   ;;  %v3672_v13 = vld [vmem:[#allocation8 + $0xec] ss:$16 sps:$4 sm:$0xff]  }
  0x80   :  { %390 = vmatprep.subr.bf16.mxu1 %v3157_v30  ;;  %v3681_v58 = vld [vmem:[#allocation8 + $0x124] ss:$16 sps:$4 sm:$0xff]   ;;  %v3679_v61 = vld [vmem:[#allocation8 + $0x120] ss:$16 sps:$4 sm:$0xff]   ;;  %v3670_v15 = vld [vmem:[#allocation8 + $0xe8] ss:$16 sps:$4 sm:$0xff]  }
  0x81   :  { %2137 = vmatpush1.bf16.msra.mxu0 %v3631_v33  ;;  %v3687_v62 = vld [vmem:[#allocation8 + $0x144] ss:$16 sps:$4 sm:$0xff]   ;;  %v3685_v2 = vld [vmem:[#allocation8 + $0x140] ss:$16 sps:$4 sm:$0xff]   ;;  %v3678_v16 = vld [vmem:[#allocation8 + $0x10c] ss:$16 sps:$4 sm:$0xff]  }
  0x82   :  { %3167 = vmatmul.mubr.msk.bf16.gmra.mrb[4].mxu1 %vm224_vm0, %v4369_v29  ;;  %2138 = vmatprep.subr.bf16.mxu0 %v3639_v34  ;;  %v3693_v3 = vld [vmem:[#allocation8 + $0x164] ss:$16 sps:$4 sm:$0xff]   ;;  %v3691_v6 = vld [vmem:[#allocation8 + $0x160] ss:$16 sps:$4 sm:$0xff]   ;;  %v3676_v17 = vld [vmem:[#allocation8 + $0x108] ss:$16 sps:$4 sm:$0xff]  }
  0x83   :  { %316 = vmatprep.mubr.bf16.mxu1 %v4226_v0  ;;  %v3699_v7 = vld [vmem:[#allocation8 + $0x184] ss:$16 sps:$4 sm:$0xff]   ;;  %v3697_v10 = vld [vmem:[#allocation8 + $0x180] ss:$16 sps:$4 sm:$0xff]   ;;  %v3684_v18 = vld [vmem:[#allocation8 + $0x12c] ss:$16 sps:$4 sm:$0xff]  }
  0x84   :  { %3171 = vmatmul.mubr.msk.bf16.gmra.mrb[4].mxu0 %vm224_vm0, %v4369_v29  ;;  %v3705_v11 = vld [vmem:[#allocation8 + $0x1a4] ss:$16 sps:$4 sm:$0xff]   ;;  %v3703_v14 = vld [vmem:[#allocation8 + $0x1a0] ss:$16 sps:$4 sm:$0xff]   ;;  %v3682_v19 = vld [vmem:[#allocation8 + $0x128] ss:$16 sps:$4 sm:$0xff]  }
  0x85   :  { %2139 = vmatpush1.bf16.msra.mxu0 %v3637_v37  ;;  %v3690_v20 = vld [vmem:[#allocation8 + $0x14c] ss:$16 sps:$4 sm:$0xff]   ;;  %v3694_v23 = vld [vmem:[#allocation8 + $0x168] ss:$16 sps:$4 sm:$0xff]   ;;  %v3711_v28 = vld [vmem:[#allocation8 + $0x1c4] ss:$16 sps:$4 sm:$0xff]  }
  0x86   :  { %2140 = vmatprep.subr.bf16.mxu0 %v3645_v38  ;;  %v3696_v22 = vld [vmem:[#allocation8 + $0x16c] ss:$16 sps:$4 sm:$0xff]   ;;  %v3700_v25 = vld [vmem:[#allocation8 + $0x188] ss:$16 sps:$4 sm:$0xff]   ;;  %v3709_v30 = vld [vmem:[#allocation8 + $0x1c0] ss:$16 sps:$4 sm:$0xff]  }
  0x87   :  { %v3702_v24 = vld [vmem:[#allocation8 + $0x18c] ss:$16 sps:$4 sm:$0xff]   ;;  %v3706_v27 = vld [vmem:[#allocation8 + $0x1a8] ss:$16 sps:$4 sm:$0xff]   ;;  %v3717_v32 = vld [vmem:[#allocation8 + $0x1e4] ss:$16 sps:$4 sm:$0xff]  }
  0x88   :  { %v3708_v26 = vld [vmem:[#allocation8 + $0x1ac] ss:$16 sps:$4 sm:$0xff]   ;;  %v3712_v31 = vld [vmem:[#allocation8 + $0x1c8] ss:$16 sps:$4 sm:$0xff]   ;;  %v3715_v34 = vld [vmem:[#allocation8 + $0x1e0] ss:$16 sps:$4 sm:$0xff]  }
  0x89   :  { %2141 = vmatpush1.bf16.msra.mxu0 %v3643_v41  ;;  %v3720_v33 = vld [vmem:[#allocation8 + $0x1ec] ss:$16 sps:$4 sm:$0xff]   ;;  %v3718_v35 = vld [vmem:[#allocation8 + $0x1e8] ss:$16 sps:$4 sm:$0xff]   ;;  %v3723_v36 = vld [vmem:[#allocation8 + $0x204] ss:$16 sps:$4 sm:$0xff]  }
  0x8a   :  { %3168 = vmatmul.mubr.msk.bf16.vlgmr.msra.gmra.mrb[8].mxu1 %vm224_vm0, %v4364_v21  ;;  %2142 = vmatprep.subr.bf16.mxu0 %v3651_v42  ;;  %v3726_v37 = vld [vmem:[#allocation8 + $0x20c] ss:$16 sps:$4 sm:$0xff]   ;;  %v4227_v38 = vmov 1966171168  }
  0x8b   :  { %326 = vmatprep.mubr.bf16.mxu1 %v4226_v0  ;;  %391 = vmatpush1.bf16.msra.mxu1 %v3156_v39  ;;  %v463_v39 = vunpack.c.l.s4 %v4227_v38  ;;  %v3742_v38 = vld [vmem:[#allocation8 + $0x268] ss:$16 sps:$4 sm:$0xff]  }
  0x8c   :  { %392 = vmatprep.subr.bf16.mxu1 %v3165_v40  ;;  %v465_v40 = vlaneseq }
  0x8d   :  { %2143 = vmatpush1.bf16.msra.mxu0 %v3649_v45  ;;  %v464_v41 = vunpack.c.0.s8 %v463_v39 }
  0x8e   :  { %2144 = vmatprep.subr.bf16.mxu0 %v3657_v46  ;;  %v466_v42 = vshrl.u32 %v465_v40, 7  ;;  %v3747_v40 = vld [vmem:[#allocation8 + $0x284] ss:$16 sps:$4 sm:$0xff]  }
  0x8f   :  { %393 = vmatpush1.bf16.msra.mxu1 %v3164_v43 }
  0x90   :  { %2346 = vmatprep.subr.bf16.mxu1 %v3630_v44  ;;  %v4390_v43 = vsub.s32 %v464_v41, %v466_v42  ;;  %v4392_v44 = vld [vmem:[#allocation7] sm:$0xff] }
  0x91   :  { %2145 = vmatpush1.bf16.msra.mxu0 %v3655_v47  ;;  %v3750_v41 = vld [vmem:[#allocation8 + $0x28c] ss:$16 sps:$4 sm:$0xff]  }
  0x92   :  { %3169 = vmatmul.mubr.msk.bf16.gmra.mrb[12].mxu1 %vm224_vm0, %v4369_v29  ;;  %2146 = vmatprep.subr.bf16.mxu0 %v3663_v48  ;;  %v468_v45 = vrot.slane %v4392_v44, %v4390_v43 }
  0x93   :  { %422 = vmatprep.mubr.bf16.mxu1 %v4226_v0 }
  0x94   :  { %v476_v46 = vcombine.high %v468_v45, %v468_v45  ;;  %v4397_v47 = vrot.slane %v468_v45, %v4390_v43  ;;  %v3745_v45 = vld [vmem:[#allocation8 + $0x280] ss:$16 sps:$4 sm:$0xff]  }
  0x95   :  { %2147 = vmatpush1.bf16.msra.mxu0 %v3661_v49 }
  0x96   :  { %2148 = vmatprep.subr.bf16.mxu0 %v3669_v50  ;;  %v498_v48 = vrot.slane %v476_v46, %v4390_v43  ;;  %v511_v49 = vpack.i.b16 %v4397_v47, %v4397_v47  ;;  %v4402_v50 = vsub.s32 0, %v466_v42  ;;  %v3748_v46 = vld [vmem:[#allocation8 + $0x288] ss:$16 sps:$4 sm:$0xff]  }
  0x99   :  { %2149 = vmatpush1.bf16.msra.mxu0 %v3667_v54  ;;  %v516_v54 = vrot.slane %v511_v49, %v4402_v50 }
  0x9a   :  { %3172 = vmatmul.mubr.msk.bf16.vlgmr.msra.gmra.mrb[16].mxu1 %vm224_vm0, %v4364_v21  ;;  %2150 = vmatprep.subr.bf16.mxu0 %v3675_v55  ;;  %v3688_v21 = vld [vmem:[#allocation8 + $0x148] ss:$16 sps:$4 sm:$0xff]  }
  0x9b   :  { %2347 = vmatpush1.bf16.msra.mxu1 %v3628_v51  ;;  %432 = vmatprep.mubr.bf16.mxu1 %v4226_v0  ;;  %v518_v51 = vpack.i.b16 %v498_v48, %v498_v48 }
  0x9c   :  { %2348 = vmatprep.subr.bf16.mxu1 %v3636_v52 }
  0x9d   :  { %2151 = vmatpush1.bf16.msra.mxu0 %v3673_v57 }
  0x9e   :  { %2152 = vmatprep.subr.bf16.mxu0 %v3681_v58 }
  0x9f   :  { %2349 = vmatpush1.bf16.msra.mxu1 %v3634_v53 }
  0xa0   :  { %2350 = vmatprep.subr.bf16.mxu1 %v3642_v56  ;;  %v523_v56 = vrot.slane %v518_v51, %v4402_v50 }
  0xa1   :  { %2153 = vmatpush1.bf16.msra.mxu0 %v3679_v61 }
  0xa2   :  { %3173 = vmatmul.mubr.msk.bf16.gmra.mrb[20].mxu1 %vm224_vm0, %v4369_v29  ;;  %2154 = vmatprep.subr.bf16.mxu0 %v3687_v62  ;;  %v3714_v29 = vld [vmem:[#allocation8 + $0x1cc] ss:$16 sps:$4 sm:$0xff]  }
  0xa3   :  { %2351 = vmatpush1.bf16.msra.mxu1 %v3640_v59 }
  0xa4   :  { %2352 = vmatprep.subr.bf16.mxu1 %v3648_v60 }
  0xa5   :  { %2155 = vmatpush1.bf16.msra.mxu0 %v3685_v2 }
  0xa6   :  { %2156 = vmatprep.subr.bf16.mxu0 %v3693_v3  ;;  %v3721_v3 = vld [vmem:[#allocation8 + $0x200] ss:$16 sps:$4 sm:$0xff]  }
  0xa7   :  { %2353 = vmatpush1.bf16.msra.mxu1 %v3646_v63 }
  0xa8   :  { %2354 = vmatprep.subr.bf16.mxu1 %v3654_v1 }
  0xa9   :  { %2157 = vmatpush1.bf16.msra.mxu0 %v3691_v6 }
  0xaa   :  { %2158 = vmatprep.subr.bf16.mxu0 %v3699_v7 }
  0xab   :  { %2355 = vmatpush1.bf16.msra.mxu1 %v3652_v4  ;;  %v3724_v4 = vld [vmem:[#allocation8 + $0x208] ss:$16 sps:$4 sm:$0xff]  }
  0xac   :  { %2356 = vmatprep.subr.bf16.mxu1 %v3660_v5 }
  0xad   :  { %2159 = vmatpush1.bf16.msra.mxu0 %v3697_v10  ;;  %v3732_v10 = vld [vmem:[#allocation8 + $0x22c] ss:$16 sps:$4 sm:$0xff]  }
  0xae   :  { %2160 = vmatprep.subr.bf16.mxu0 %v3705_v11 }
  0xaf   :  { %2357 = vmatpush1.bf16.msra.mxu1 %v3658_v8 }
  0xb0   :  { %2358 = vmatprep.subr.bf16.mxu1 %v3666_v9  ;;  %v3729_v9 = vld [vmem:[#allocation8 + $0x224] ss:$16 sps:$4 sm:$0xff]  }
  0xb1   :  { %2161 = vmatpush1.bf16.msra.mxu0 %v3703_v14  ;;  %v508_v14 = vcombine.high %v498_v48, %v498_v48 }
  0xb2   :  { %2162 = vmatprep.subr.bf16.mxu0 %v3711_v28 }
  0xb3   :  { %2359 = vmatpush1.bf16.msra.mxu1 %v3664_v12 }
  0xb4   :  { %2360 = vmatprep.subr.bf16.mxu1 %v3672_v13 }
  0xb5   :  { %2163 = vmatpush1.bf16.msra.mxu0 %v3709_v30  ;;  %v3741_v30 = vld [vmem:[#allocation8 + $0x264] ss:$16 sps:$4 sm:$0xff]  }
  0xb6   :  { %2164 = vmatprep.subr.bf16.mxu0 %v3717_v32 }
  0xb7   :  { %2361 = vmatpush1.bf16.msra.mxu1 %v3670_v15 }
  0xb8   :  { %2362 = vmatprep.subr.bf16.mxu1 %v3678_v16 }
  0xb9   :  { %2165 = vmatpush1.bf16.msra.mxu0 %v3715_v34 }
  0xba   :  { %2187 = vmatprep.subr.bf16.mxu0 %v3723_v36 }
  0xbb   :  { %2363 = vmatpush1.bf16.msra.mxu1 %v3676_v17  ;;  %v3727_v17 = vld [vmem:[#allocation8 + $0x220] ss:$16 sps:$4 sm:$0xff]  }
  0xbc   :  { %2364 = vmatprep.subr.bf16.mxu1 %v3684_v18  ;;  %v3730_v18 = vld [vmem:[#allocation8 + $0x228] ss:$16 sps:$4 sm:$0xff]  }
  0xbf   :  { %2365 = vmatpush1.bf16.msra.mxu1 %v3682_v19 }
  0xc0   :  { %2366 = vmatprep.subr.bf16.mxu1 %v3690_v20  ;;  %v3735_v20 = vld [vmem:[#allocation8 + $0x244] ss:$16 sps:$4 sm:$0xff]  }
  0xc3   :  { %2367 = vmatpush1.bf16.msra.mxu1 %v3688_v21  ;;  %v3738_v21 = vld [vmem:[#allocation8 + $0x24c] ss:$16 sps:$4 sm:$0xff]  }
  0xc4   :  { %2368 = vmatprep.subr.bf16.mxu1 %v3696_v22 }
  0xc7   :  { %2369 = vmatpush1.bf16.msra.mxu1 %v3694_v23 }
  0xc8   :  { %2370 = vmatprep.subr.bf16.mxu1 %v3702_v24  ;;  %v532_v24 = vpack.i.b16 %v508_v14, %v508_v14  ;;  %v3765_v14 = vld [vmem:[#allocation8 + $0x2e4] ss:$16 sps:$4 sm:$0xff]  }
  0xca   :  { %v4427_v34 = vrot.slane %v532_v24, %v4402_v50  ;;  %v3774_v24 = vld [vmem:[#allocation8 + $0x30c] ss:$16 sps:$4 sm:$0xff]  }
  0xcb   :  { %2371 = vmatpush1.bf16.msra.mxu1 %v3700_v25 }
  0xcc   :  { %2372 = vmatprep.subr.bf16.mxu1 %v3708_v26  ;;  %v3733_v26 = vld [vmem:[#allocation8 + $0x240] ss:$16 sps:$4 sm:$0xff]  }
  0xcf   :  { %2373 = vmatpush1.bf16.msra.mxu1 %v3706_v27  ;;  %v3736_v27 = vld [vmem:[#allocation8 + $0x248] ss:$16 sps:$4 sm:$0xff]  }
  0xd0   :  { %2374 = vmatprep.subr.bf16.mxu1 %v3714_v29 }
  0xd3   :  { %2375 = vmatpush1.bf16.msra.mxu1 %v3712_v31  ;;  %v3744_v31 = vld [vmem:[#allocation8 + $0x26c] ss:$16 sps:$4 sm:$0xff]  }
  0xd4   :  { %2376 = vmatprep.subr.bf16.mxu1 %v3720_v33 }
  0xd7   :  { %2377 = vmatpush1.bf16.msra.mxu1 %v3718_v35 }
  0xd8   :  { %2399 = vmatprep.subr.bf16.mxu1 %v3726_v37  ;;  %v3739_v37 = vld [vmem:[#allocation8 + $0x260] ss:$16 sps:$4 sm:$0xff]  }
 0x14d   :  { %v265_v52 = vpop.f32.mrb[0].mxu1 }
 0x14e   :  { %v267_v53 = vpop.f32.mrb[1].mxu1 }
 0x14f   :  { %v269_v55 = vpop.f32.mrb[2].mxu1  ;;  %v4406_v61 = vpop.f32.mrb[0].mxu0 }
 0x150   :  { %v443_v57 = vpack.c.bf16 %v269_v55, %v265_v52  ;;  %v271_v58 = vpop.f32.mrb[3].mxu1  ;;  %v4408_v63 = vpop.f32.mrb[1].mxu0  ;;  %v3753_v52 = vld [vmem:[#allocation8 + $0x2a4] ss:$16 sps:$4 sm:$0xff]  }
 0x151   :  { %v444_v59 = vpack.c.bf16 %v271_v58, %v267_v53  ;;  %v4410_v1 = vpop.f32.mrb[2].mxu0  ;;  %v3756_v53 = vld [vmem:[#allocation8 + $0x2ac] ss:$16 sps:$4 sm:$0xff]  }
 0x152   :  { %v566_v60 = vadd.bf16 %v516_v54, %v443_v57  ;;  %v447_v6 = vpack.c.bf16 %v4410_v1, %v4406_v61  ;;  %v4415_v7 = vpop.f32.mrb[3].mxu0  ;;  %v3922_v61 = vld [vmem:[#allocation8 + $0x624] ss:$16 sps:$4 sm:$0xff]   ;;  %v3925_v1 = vld [vmem:[#allocation8 + $0x62c] ss:$16 sps:$4 sm:$0xff]  }
 0x153   :  { %v567_v62 = vadd.bf16 %v523_v56, %v444_v59  ;;  %v448_v12 = vpack.c.bf16 %v4415_v7, %v4408_v63  ;;  %v3838_v63 = vld [vmem:[#allocation8 + $0x468] ss:$16 sps:$4 sm:$0xff]   ;;  %v3843_v7 = vld [vmem:[#allocation8 + $0x484] ss:$16 sps:$4 sm:$0xff]  }
 0x154   :  { %v582_v8 = vmax.bf16 %v4226_v0, %v566_v60 }
 0x155   :  { %v583_v2 = vmax.bf16 %v4226_v0, %v567_v62  ;;  %v275_v5 = vpop.f32.mrb[4].mxu1  ;;  %v3751_v62 = vld [vmem:[#allocation8 + $0x2a0] ss:$16 sps:$4 sm:$0xff]  }
 0x156   :  { %v277_v11 = vpop.f32.mrb[5].mxu1 }
 0x157   :  { %2166 = vmatprep.mubr.bf16.mxu0 %v583_v2  ;;  %2378 = vmatprep.mubr.bf16.mxu1 %v583_v2  ;;  %v279_v13 = vpop.f32.mrb[6].mxu1  ;;  %v4435_v51 = vpop.f32.mrb[4].mxu0  ;;  %v3754_v2 = vld [vmem:[#allocation8 + $0x2a8] ss:$16 sps:$4 sm:$0xff]  }
 0x158   :  { %2167 = vmatmul.mubr.bf16.vlgmr.msra.gmra.mrb[8].mxu0 %v582_v8  ;;  %2379 = vmatmul.mubr.bf16.vlgmr.msra.gmra.mrb[24].mxu1 %v582_v8  ;;  %v451_v15 = vpack.c.bf16 %v279_v13, %v275_v5  ;;  %v281_v16 = vpop.f32.mrb[7].mxu1  ;;  %v4439_v55 = vpop.f32.mrb[5].mxu0  ;;  %v3759_v5 = vld [vmem:[#allocation8 + $0x2c4] ss:$16 sps:$4 sm:$0xff]   ;;  %v3762_v8 = vld [vmem:[#allocation8 + $0x2cc] ss:$16 sps:$4 sm:$0xff]  }
 0x159   :  { %2188 = vmatpush1.bf16.msra.mxu0 %v3721_v3  ;;  %2400 = vmatpush1.bf16.msra.mxu1 %v3724_v4  ;;  %v452_v19 = vpack.c.bf16 %v281_v16, %v277_v11  ;;  %v4443_v57 = vpop.f32.mrb[6].mxu0  ;;  %v3760_v11 = vld [vmem:[#allocation8 + $0x2c8] ss:$16 sps:$4 sm:$0xff]  }
 0x15a   :  { %2189 = vmatprep.subr.bf16.mxu0 %v3729_v9  ;;  %2401 = vmatprep.subr.bf16.mxu1 %v3732_v10  ;;  %v574_v22 = vadd.bf16 %v516_v54, %v451_v15  ;;  %v455_v60 = vpack.c.bf16 %v4443_v57, %v4435_v51  ;;  %v4453_v4 = vpop.f32.mrb[7].mxu0  ;;  %v3757_v10 = vld [vmem:[#allocation8 + $0x2c0] ss:$16 sps:$4 sm:$0xff]   ;;  %v3768_v15 = vld [vmem:[#allocation8 + $0x2ec] ss:$16 sps:$4 sm:$0xff]  }
 0x15b   :  { %v575_v23 = vadd.bf16 %v523_v56, %v452_v19  ;;  %v456_v9 = vpack.c.bf16 %v4453_v4, %v4439_v55  ;;  %v3920_v4 = vld [vmem:[#allocation8 + $0x620] ss:$16 sps:$4 sm:$0xff]   ;;  %v3929_v57 = vld [vmem:[#allocation8 + $0x648] ss:$16 sps:$4 sm:$0xff]  }
 0x15c   :  { %v590_v25 = vmax.bf16 %v4226_v0, %v574_v22  ;;  %v3926_v51 = vld [vmem:[#allocation8 + $0x640] ss:$16 sps:$4 sm:$0xff]  }
 0x15d   :  { %2190 = vmatpush1.bf16.msra.mxu0 %v3727_v17  ;;  %2402 = vmatpush1.bf16.msra.mxu1 %v3730_v18  ;;  %v4421_v28 = vpop.f32.mrb[8].mxu1  ;;  %v591_v29 = vmax.bf16 %v4226_v0, %v575_v23  ;;  %v3771_v23 = vld [vmem:[#allocation8 + $0x304] ss:$16 sps:$4 sm:$0xff]  }
 0x15e   :  { %2191 = vmatprep.subr.bf16.mxu0 %v3735_v20  ;;  %2403 = vmatprep.subr.bf16.mxu1 %v3738_v21  ;;  %v320_v32 = vpop.f32.mrb[9].mxu1  ;;  %v3763_v20 = vld [vmem:[#allocation8 + $0x2e0] ss:$16 sps:$4 sm:$0xff]   ;;  %v3766_v21 = vld [vmem:[#allocation8 + $0x2e8] ss:$16 sps:$4 sm:$0xff]  }
 0x15f   :  { %2176 = vmatprep.mubr.bf16.mxu0 %v591_v29  ;;  %2388 = vmatprep.mubr.bf16.mxu1 %v591_v29  ;;  %v4424_v33 = vpop.f32.mrb[10].mxu1  ;;  %v3780_v29 = vld [vmem:[#allocation8 + $0x32c] ss:$16 sps:$4 sm:$0xff]  }
 0x160   :  { %v445_v35 = vpack.c.bf16 %v4424_v33, %v4421_v28  ;;  %2177 = vmatmul.mubr.bf16.gmra.mrb[12].mxu0 %v590_v25  ;;  %2389 = vmatmul.mubr.bf16.gmra.mrb[28].mxu1 %v590_v25  ;;  %v324_v36 = vpop.f32.mrb[11].mxu1  ;;  %v3769_v25 = vld [vmem:[#allocation8 + $0x300] ss:$16 sps:$4 sm:$0xff]  }
 0x161   :  { %2192 = vmatpush1.bf16.msra.mxu0 %v3733_v26  ;;  %2404 = vmatpush1.bf16.msra.mxu1 %v3736_v27  ;;  %v446_v39 = vpack.c.bf16 %v324_v36, %v320_v32  ;;  %v3772_v26 = vld [vmem:[#allocation8 + $0x308] ss:$16 sps:$4 sm:$0xff]   ;;  %v3777_v27 = vld [vmem:[#allocation8 + $0x324] ss:$16 sps:$4 sm:$0xff]   ;;  %v3786_v36 = vld [vmem:[#allocation8 + $0x34c] ss:$16 sps:$4 sm:$0xff]  }
 0x162   :  { %2193 = vmatprep.subr.bf16.mxu0 %v3741_v30  ;;  %2405 = vmatprep.subr.bf16.mxu1 %v3744_v31  ;;  %v3775_v30 = vld [vmem:[#allocation8 + $0x320] ss:$16 sps:$4 sm:$0xff]   ;;  %v3778_v31 = vld [vmem:[#allocation8 + $0x328] ss:$16 sps:$4 sm:$0xff]   ;;  %v3783_v32 = vld [vmem:[#allocation8 + $0x344] ss:$16 sps:$4 sm:$0xff]  }
 0x163   :  { %v569_v42 = vadd.bf16 %v4427_v34, %v446_v39  ;;  %v3789_v39 = vld [vmem:[#allocation8 + $0x364] ss:$16 sps:$4 sm:$0xff]  }
 0x165   :  { %2194 = vmatpush1.bf16.msra.mxu0 %v3739_v37  ;;  %2406 = vmatpush1.bf16.msra.mxu1 %v3742_v38  ;;  %v585_v48 = vmax.bf16 %v4226_v0, %v569_v42  ;;  %v4433_v49 = vpop.f32.mrb[12].mxu1  ;;  %v3781_v37 = vld [vmem:[#allocation8 + $0x340] ss:$16 sps:$4 sm:$0xff]   ;;  %v3784_v38 = vld [vmem:[#allocation8 + $0x348] ss:$16 sps:$4 sm:$0xff]  }
 0x166   :  { %2195 = vmatprep.subr.bf16.mxu0 %v3747_v40  ;;  %2407 = vmatprep.subr.bf16.mxu1 %v3750_v41  ;;  %v4437_v54 = vpop.f32.mrb[13].mxu1  ;;  %v3792_v40 = vld [vmem:[#allocation8 + $0x36c] ss:$16 sps:$4 sm:$0xff]   ;;  %v3787_v41 = vld [vmem:[#allocation8 + $0x360] ss:$16 sps:$4 sm:$0xff]  }
 0x167   :  { %2219 = vmatprep.mubr.bf16.mxu0 %v585_v48  ;;  %2431 = vmatprep.mubr.bf16.mxu1 %v585_v48  ;;  %v4441_v56 = vpop.f32.mrb[14].mxu1  ;;  %v3790_v42 = vld [vmem:[#allocation8 + $0x368] ss:$16 sps:$4 sm:$0xff]   ;;  %v461_v48 = vcombine.high %v4392_v44, %v4392_v44 }
 0x168   :  { %v453_v58 = vpack.c.bf16 %v4441_v56, %v4433_v49  ;;  %v4447_v59 = vpop.f32.mrb[15].mxu1  ;;  %v3829_v49 = vld [vmem:[#allocation8 + $0x440] ss:$16 sps:$4 sm:$0xff]   ;;  %v3832_v56 = vld [vmem:[#allocation8 + $0x448] ss:$16 sps:$4 sm:$0xff]  }
 0x169   :  { %2196 = vmatpush1.bf16.msra.mxu0 %v3745_v45  ;;  %2408 = vmatpush1.bf16.msra.mxu1 %v3748_v46  ;;  %v454_v3 = vpack.c.bf16 %v4447_v59, %v4437_v54  ;;  %v3795_v45 = vld [vmem:[#allocation8 + $0x384] ss:$16 sps:$4 sm:$0xff]   ;;  %v3798_v46 = vld [vmem:[#allocation8 + $0x38c] ss:$16 sps:$4 sm:$0xff]  }
 0x16a   :  { %2197 = vmatprep.subr.bf16.mxu0 %v3753_v52  ;;  %2409 = vmatprep.subr.bf16.mxu1 %v3756_v53  ;;  %v3793_v52 = vld [vmem:[#allocation8 + $0x380] ss:$16 sps:$4 sm:$0xff]   ;;  %v3796_v53 = vld [vmem:[#allocation8 + $0x388] ss:$16 sps:$4 sm:$0xff]   ;;  %v3828_v59 = vld [vmem:[#allocation8 + $0x42c] ss:$16 sps:$4 sm:$0xff]  }
 0x16d   :  { %2198 = vmatpush1.bf16.msra.mxu0 %v3751_v62  ;;  %2410 = vmatpush1.bf16.msra.mxu1 %v3754_v2  ;;  %v4457_v13 = vpop.f32.mrb[16].mxu1  ;;  %v3801_v62 = vld [vmem:[#allocation8 + $0x3a4] ss:$16 sps:$4 sm:$0xff]   ;;  %v3804_v2 = vld [vmem:[#allocation8 + $0x3ac] ss:$16 sps:$4 sm:$0xff]  }
 0x16e   :  { %2199 = vmatprep.subr.bf16.mxu0 %v3759_v5  ;;  %2411 = vmatprep.subr.bf16.mxu1 %v3762_v8  ;;  %v4459_v16 = vpop.f32.mrb[17].mxu1  ;;  %v506_v5 = vcombine.high %v4397_v47, %v4397_v47  ;;  %v4474_v8 = vrot.slane %v461_v48, %v4390_v43  ;;  %v3823_v48 = vld [vmem:[#allocation8 + $0x420] ss:$16 sps:$4 sm:$0xff]  }
 0x16f   :  { %v4461_v17 = vpop.f32.mrb[18].mxu1 }
 0x170   :  { %v449_v18 = vpack.c.bf16 %v4461_v17, %v4457_v13  ;;  %v4465_v19 = vpop.f32.mrb[19].mxu1  ;;  %v525_v44 = vpack.i.b16 %v506_v5, %v506_v5  ;;  %v4016_v17 = vld [vmem:[#allocation10 + $0x8] sm:$0xff]  }
 0x171   :  { %2200 = vmatpush1.bf16.msra.mxu0 %v3757_v10  ;;  %2412 = vmatpush1.bf16.msra.mxu1 %v3760_v11  ;;  %v450_v22 = vpack.c.bf16 %v4465_v19, %v4459_v16  ;;  %v3799_v10 = vld [vmem:[#allocation8 + $0x3a0] ss:$16 sps:$4 sm:$0xff]   ;;  %v3802_v11 = vld [vmem:[#allocation8 + $0x3a8] ss:$16 sps:$4 sm:$0xff]  }
 0x172   :  { %2201 = vmatprep.subr.bf16.mxu0 %v3765_v14  ;;  %2413 = vmatprep.subr.bf16.mxu1 %v3768_v15  ;;  %v3807_v14 = vld [vmem:[#allocation8 + $0x3c4] ss:$16 sps:$4 sm:$0xff]   ;;  %v3810_v15 = vld [vmem:[#allocation8 + $0x3cc] ss:$16 sps:$4 sm:$0xff]   ;;  %v530_v47 = vrot.slane %v525_v44, %v4402_v50  ;;  %v3835_v44 = vld [vmem:[#allocation8 + $0x460] ss:$16 sps:$4 sm:$0xff]  }
 0x173   :  { %v3932_v16 = vld [vmem:[#allocation8 + $0x660] ss:$16 sps:$4 sm:$0xff]   ;;  %v3935_v19 = vld [vmem:[#allocation8 + $0x668] ss:$16 sps:$4 sm:$0xff]  }
 0x175   :  { %2202 = vmatpush1.bf16.msra.mxu0 %v3763_v20  ;;  %2414 = vmatpush1.bf16.msra.mxu1 %v3766_v21  ;;  %v477_v20 = vcombine.high %v4474_v8, %v4474_v8  ;;  %v3805_v21 = vld [vmem:[#allocation8 + $0x3c0] ss:$16 sps:$4 sm:$0xff]  }
 0x176   :  { %2203 = vmatprep.subr.bf16.mxu0 %v3771_v23  ;;  %2415 = vmatprep.subr.bf16.mxu1 %v3774_v24  ;;  %v3808_v23 = vld [vmem:[#allocation8 + $0x3c8] ss:$16 sps:$4 sm:$0xff]   ;;  %v3813_v24 = vld [vmem:[#allocation8 + $0x3e4] ss:$16 sps:$4 sm:$0xff]  }
 0x179   :  { %2204 = vmatpush1.bf16.msra.mxu0 %v3769_v25  ;;  %2416 = vmatpush1.bf16.msra.mxu1 %v3772_v26  ;;  %v3816_v25 = vld [vmem:[#allocation8 + $0x3ec] ss:$16 sps:$4 sm:$0xff]   ;;  %v4480_v26 = vrot.slane %v477_v20, %v4390_v43  ;;  %v3849_v20 = vld [vmem:[#allocation8 + $0x4a4] ss:$16 sps:$4 sm:$0xff]  }
 0x17a   :  { %2205 = vmatprep.subr.bf16.mxu0 %v3777_v27  ;;  %2417 = vmatprep.subr.bf16.mxu1 %v3780_v29  ;;  %v3811_v27 = vld [vmem:[#allocation8 + $0x3e0] ss:$16 sps:$4 sm:$0xff]   ;;  %v3814_v29 = vld [vmem:[#allocation8 + $0x3e8] ss:$16 sps:$4 sm:$0xff]  }
 0x17d   :  { %2206 = vmatpush1.bf16.msra.mxu0 %v3775_v30  ;;  %2418 = vmatpush1.bf16.msra.mxu1 %v3778_v31  ;;  %v4482_v30 = vpop.f32.mrb[20].mxu1  ;;  %v568_v31 = vadd.bf16 %v530_v47, %v445_v35  ;;  %v3817_v35 = vld [vmem:[#allocation8 + $0x400] ss:$16 sps:$4 sm:$0xff]  }
 0x17e   :  { %2207 = vmatprep.subr.bf16.mxu0 %v3783_v32  ;;  %2419 = vmatprep.subr.bf16.mxu1 %v3786_v36  ;;  %v3819_v32 = vld [vmem:[#allocation8 + $0x404] ss:$16 sps:$4 sm:$0xff]   ;;  %v3822_v36 = vld [vmem:[#allocation8 + $0x40c] ss:$16 sps:$4 sm:$0xff]  }
 0x17f   :  { %v584_v54 = vmax.bf16 %v4226_v0, %v568_v31  ;;  %v3861_v31 = vld [vmem:[#allocation8 + $0x4e4] ss:$16 sps:$4 sm:$0xff]  }
 0x181   :  { %2208 = vmatpush1.bf16.msra.mxu0 %v3781_v37  ;;  %2420 = vmatpush1.bf16.msra.mxu1 %v3784_v38  ;;  %v4487_v37 = vpop.f32.mrb[21].mxu1  ;;  %v577_v38 = vadd.bf16 %v4427_v34, %v454_v3  ;;  %v3825_v34 = vld [vmem:[#allocation8 + $0x424] ss:$16 sps:$4 sm:$0xff]  }
 0x182   :  { %2209 = vmatprep.subr.bf16.mxu0 %v3789_v39  ;;  %2421 = vmatprep.subr.bf16.mxu1 %v3792_v40  ;;  %v546_v39 = vpack.i.b16 %v4480_v26, %v4480_v26  ;;  %v4495_v40 = vpop.f32.mrb[22].mxu1 }
 0x183   :  { %v457_v28 = vpack.c.bf16 %v4495_v40, %v4482_v30  ;;  %v4499_v33 = vpop.f32.mrb[23].mxu1  ;;  %v593_v3 = vmax.bf16 %v4226_v0, %v577_v38  ;;  %v3862_v38 = vld [vmem:[#allocation8 + $0x4e8] ss:$16 sps:$4 sm:$0xff]  }
 0x184   :  { %v4024_v30 = vld [vmem:[#allocation10 + $0x18] sm:$0xff]  }
 0x185   :  { %2210 = vmatpush1.bf16.msra.mxu0 %v3787_v41  ;;  %2422 = vmatpush1.bf16.msra.mxu1 %v3790_v42  ;;  %v3820_v41 = vld [vmem:[#allocation8 + $0x408] ss:$16 sps:$4 sm:$0xff]   ;;  %v458_v42 = vpack.c.bf16 %v4499_v33, %v4487_v37  ;;  %v4013_v37 = vld [vmem:[#allocation10 + $0x80] sm:$0xff]  }
 0x186   :  { %2211 = vmatprep.subr.bf16.mxu0 %v3795_v45  ;;  %2423 = vmatprep.subr.bf16.mxu1 %v3798_v46  ;;  %v4506_v45 = vrot.slane %v546_v39, %v4402_v50  ;;  %v576_v46 = vadd.bf16 %v530_v47, %v453_v58  ;;  %v3837_v58 = vld [vmem:[#allocation8 + $0x464] ss:$16 sps:$4 sm:$0xff]   ;;  %v3850_v47 = vld [vmem:[#allocation8 + $0x4a8] ss:$16 sps:$4 sm:$0xff]  }
 0x187   :  { %v3867_v39 = vld [vmem:[#allocation8 + $0x504] ss:$16 sps:$4 sm:$0xff]   ;;  %v4014_v33 = vld [vmem:[#allocation10 + $0x48] sm:$0xff]   ;;  %v4025_v40 = vld [vmem:[#allocation10 + $0x98] sm:$0xff]  }
 0x188   :  { %v592_v5 = vmax.bf16 %v4226_v0, %v576_v46  ;;  %v3874_v46 = vld [vmem:[#allocation8 + $0x528] ss:$16 sps:$4 sm:$0xff]  }
 0x189   :  { %2212 = vmatpush1.bf16.msra.mxu0 %v3793_v52  ;;  %2424 = vmatpush1.bf16.msra.mxu1 %v3796_v53  ;;  %v3826_v52 = vld [vmem:[#allocation8 + $0x428] ss:$16 sps:$4 sm:$0xff]   ;;  %v3831_v53 = vld [vmem:[#allocation8 + $0x444] ss:$16 sps:$4 sm:$0xff]  }
 0x18a   :  { %2213 = vmatprep.subr.bf16.mxu0 %v3801_v62  ;;  %2425 = vmatprep.subr.bf16.mxu1 %v3804_v2  ;;  %v3834_v62 = vld [vmem:[#allocation8 + $0x44c] ss:$16 sps:$4 sm:$0xff]   ;;  %v571_v2 = vadd.bf16 %v4506_v45, %v448_v12 }
 0x18b   :  { %v3846_v12 = vld [vmem:[#allocation8 + $0x48c] ss:$16 sps:$4 sm:$0xff]  }
 0x18d   :  { %2214 = vmatpush1.bf16.msra.mxu0 %v3799_v10  ;;  %2426 = vmatpush1.bf16.msra.mxu1 %v3802_v11  ;;  %v3840_v10 = vld [vmem:[#allocation8 + $0x46c] ss:$16 sps:$4 sm:$0xff]   ;;  %v587_v11 = vmax.bf16 %v4226_v0, %v571_v2  ;;  %v3885_v2 = vld [vmem:[#allocation8 + $0x564] ss:$16 sps:$4 sm:$0xff]  }
 0x18e   :  { %2215 = vmatprep.subr.bf16.mxu0 %v3807_v14  ;;  %2427 = vmatprep.subr.bf16.mxu1 %v3810_v15  ;;  %v3841_v14 = vld [vmem:[#allocation8 + $0x480] ss:$16 sps:$4 sm:$0xff]   ;;  %v3844_v15 = vld [vmem:[#allocation8 + $0x488] ss:$16 sps:$4 sm:$0xff]  }
 0x191   :  { %2216 = vmatpush1.bf16.msra.mxu0 %v3805_v21  ;;  %2428 = vmatpush1.bf16.msra.mxu1 %v3808_v23  ;;  %v3852_v21 = vld [vmem:[#allocation8 + $0x4ac] ss:$16 sps:$4 sm:$0xff]   ;;  %v3847_v23 = vld [vmem:[#allocation8 + $0x4a0] ss:$16 sps:$4 sm:$0xff]  }
 0x192   :  { %2217 = vmatprep.subr.bf16.mxu0 %v3813_v24  ;;  %2429 = vmatprep.subr.bf16.mxu1 %v3816_v25  ;;  %v3855_v24 = vld [vmem:[#allocation8 + $0x4c4] ss:$16 sps:$4 sm:$0xff]   ;;  %v3858_v25 = vld [vmem:[#allocation8 + $0x4cc] ss:$16 sps:$4 sm:$0xff]  }
 0x195   :  { %2218 = vmatpush1.bf16.msra.mxu0 %v3811_v27  ;;  %2430 = vmatpush1.bf16.msra.mxu1 %v3814_v29  ;;  %v3853_v27 = vld [vmem:[#allocation8 + $0x4c0] ss:$16 sps:$4 sm:$0xff]   ;;  %v3856_v29 = vld [vmem:[#allocation8 + $0x4c8] ss:$16 sps:$4 sm:$0xff]  }
 0x196   :  { %2240 = vmatprep.subr.bf16.mxu0 %v3819_v32  ;;  %2452 = vmatprep.subr.bf16.mxu1 %v3822_v36  ;;  %v3864_v32 = vld [vmem:[#allocation8 + $0x4ec] ss:$16 sps:$4 sm:$0xff]   ;;  %v3859_v36 = vld [vmem:[#allocation8 + $0x4e0] ss:$16 sps:$4 sm:$0xff]  }
 0x198   :  { %2220 = vmatmul.mubr.bf16.vlgmr.msra.gmra.mrb[8].mxu0 %v584_v54  ;;  %2432 = vmatmul.mubr.bf16.vlgmr.msra.gmra.mrb[24].mxu1 %v584_v54  ;;  %v3868_v54 = vld [vmem:[#allocation8 + $0x508] ss:$16 sps:$4 sm:$0xff]  }
 0x199   :  { %2241 = vmatpush1.bf16.msra.mxu0 %v3817_v35  ;;  %2453 = vmatpush1.bf16.msra.mxu1 %v3820_v41  ;;  %v3870_v35 = vld [vmem:[#allocation8 + $0x50c] ss:$16 sps:$4 sm:$0xff]   ;;  %v3865_v41 = vld [vmem:[#allocation8 + $0x500] ss:$16 sps:$4 sm:$0xff]  }
 0x19a   :  { %2242 = vmatprep.subr.bf16.mxu0 %v3825_v34  ;;  %2454 = vmatprep.subr.bf16.mxu1 %v3828_v59  ;;  %v3873_v34 = vld [vmem:[#allocation8 + $0x524] ss:$16 sps:$4 sm:$0xff]   ;;  %v3876_v59 = vld [vmem:[#allocation8 + $0x52c] ss:$16 sps:$4 sm:$0xff]  }
 0x19b   :  { %2229 = vmatprep.mubr.bf16.mxu0 %v593_v3  ;;  %2441 = vmatprep.mubr.bf16.mxu1 %v593_v3  ;;  %v3871_v3 = vld [vmem:[#allocation8 + $0x520] ss:$16 sps:$4 sm:$0xff]  }
 0x19d   :  { %2243 = vmatpush1.bf16.msra.mxu0 %v3823_v48  ;;  %2455 = vmatpush1.bf16.msra.mxu1 %v3826_v52  ;;  %v3879_v48 = vld [vmem:[#allocation8 + $0x544] ss:$16 sps:$4 sm:$0xff]   ;;  %v3882_v52 = vld [vmem:[#allocation8 + $0x54c] ss:$16 sps:$4 sm:$0xff]  }
 0x19e   :  { %2244 = vmatprep.subr.bf16.mxu0 %v3831_v53  ;;  %2456 = vmatprep.subr.bf16.mxu1 %v3834_v62  ;;  %v3877_v53 = vld [vmem:[#allocation8 + $0x540] ss:$16 sps:$4 sm:$0xff]   ;;  %v3880_v62 = vld [vmem:[#allocation8 + $0x548] ss:$16 sps:$4 sm:$0xff]  }
 0x1a0   :  { %2230 = vmatmul.mubr.bf16.gmra.mrb[12].mxu0 %v592_v5  ;;  %2442 = vmatmul.mubr.bf16.gmra.mrb[28].mxu1 %v592_v5  ;;  %v3888_v5 = vld [vmem:[#allocation8 + $0x56c] ss:$16 sps:$4 sm:$0xff]  }
 0x1a1   :  { %2245 = vmatpush1.bf16.msra.mxu0 %v3829_v49  ;;  %2457 = vmatpush1.bf16.msra.mxu1 %v3832_v56  ;;  %v3883_v49 = vld [vmem:[#allocation8 + $0x560] ss:$16 sps:$4 sm:$0xff]   ;;  %v3886_v56 = vld [vmem:[#allocation8 + $0x568] ss:$16 sps:$4 sm:$0xff]  }
 0x1a2   :  { %2246 = vmatprep.subr.bf16.mxu0 %v3837_v58  ;;  %2458 = vmatprep.subr.bf16.mxu1 %v3840_v10  ;;  %v3891_v58 = vld [vmem:[#allocation8 + $0x584] ss:$16 sps:$4 sm:$0xff]   ;;  %v3894_v10 = vld [vmem:[#allocation8 + $0x58c] ss:$16 sps:$4 sm:$0xff]  }
 0x1a3   :  { %2272 = vmatprep.mubr.bf16.mxu0 %v587_v11  ;;  %2484 = vmatprep.mubr.bf16.mxu1 %v587_v11  ;;  %v3889_v11 = vld [vmem:[#allocation8 + $0x580] ss:$16 sps:$4 sm:$0xff]  }
 0x1a5   :  { %2247 = vmatpush1.bf16.msra.mxu0 %v3835_v44  ;;  %2459 = vmatpush1.bf16.msra.mxu1 %v3838_v63  ;;  %v3892_v44 = vld [vmem:[#allocation8 + $0x588] ss:$16 sps:$4 sm:$0xff]   ;;  %v3897_v63 = vld [vmem:[#allocation8 + $0x5a4] ss:$16 sps:$4 sm:$0xff]  }
 0x1a6   :  { %2248 = vmatprep.subr.bf16.mxu0 %v3843_v7  ;;  %2460 = vmatprep.subr.bf16.mxu1 %v3846_v12  ;;  %v3900_v7 = vld [vmem:[#allocation8 + $0x5ac] ss:$16 sps:$4 sm:$0xff]   ;;  %v4519_v12 = vrot.slane %v4474_v8, %v4390_v43  ;;  %v3910_v8 = vld [vmem:[#allocation8 + $0x5e4] ss:$16 sps:$4 sm:$0xff]  }
 0x1a9   :  { %2249 = vmatpush1.bf16.msra.mxu0 %v3841_v14  ;;  %2461 = vmatpush1.bf16.msra.mxu1 %v3844_v15  ;;  %v3895_v14 = vld [vmem:[#allocation8 + $0x5a0] ss:$16 sps:$4 sm:$0xff]   ;;  %v3898_v15 = vld [vmem:[#allocation8 + $0x5a8] ss:$16 sps:$4 sm:$0xff]  }
 0x1aa   :  { %2250 = vmatprep.subr.bf16.mxu0 %v3849_v20  ;;  %2462 = vmatprep.subr.bf16.mxu1 %v3852_v21  ;;  %v539_v20 = vpack.i.b16 %v4519_v12, %v4519_v12  ;;  %v3904_v21 = vld [vmem:[#allocation8 + $0x5c4] ss:$16 sps:$4 sm:$0xff]  }
 0x1ad   :  { %2251 = vmatpush1.bf16.msra.mxu0 %v3847_v23  ;;  %2463 = vmatpush1.bf16.msra.mxu1 %v3850_v47  ;;  %v3907_v23 = vld [vmem:[#allocation8 + $0x5cc] ss:$16 sps:$4 sm:$0xff]   ;;  %v3902_v47 = vld [vmem:[#allocation8 + $0x5c0] ss:$16 sps:$4 sm:$0xff]  }
 0x1ae   :  { %2252 = vmatprep.subr.bf16.mxu0 %v3855_v24  ;;  %2464 = vmatprep.subr.bf16.mxu1 %v3858_v25  ;;  %v3905_v24 = vld [vmem:[#allocation8 + $0x5c8] ss:$16 sps:$4 sm:$0xff]   ;;  %v544_v25 = vrot.slane %v539_v20, %v4402_v50  ;;  %v3956_v20 = vld [vmem:[#allocation8 + $0x6e0] ss:$16 sps:$4 sm:$0xff]  }
 0x1b0   :  { %v578_v55 = vadd.bf16 %v544_v25, %v455_v60  ;;  %v3934_v60 = vld [vmem:[#allocation8 + $0x664] ss:$16 sps:$4 sm:$0xff]  }
 0x1b1   :  { %2253 = vmatpush1.bf16.msra.mxu0 %v3853_v27  ;;  %2465 = vmatpush1.bf16.msra.mxu1 %v3856_v29  ;;  %v3913_v27 = vld [vmem:[#allocation8 + $0x5ec] ss:$16 sps:$4 sm:$0xff]   ;;  %v509_v29 = vcombine.high %v4480_v26, %v4480_v26  ;;  %v3914_v26 = vld [vmem:[#allocation8 + $0x600] ss:$16 sps:$4 sm:$0xff]  }
 0x1b2   :  { %2254 = vmatprep.subr.bf16.mxu0 %v3861_v31  ;;  %2466 = vmatprep.subr.bf16.mxu1 %v3864_v32  ;;  %v3908_v31 = vld [vmem:[#allocation8 + $0x5e0] ss:$16 sps:$4 sm:$0xff]   ;;  %v3911_v32 = vld [vmem:[#allocation8 + $0x5e8] ss:$16 sps:$4 sm:$0xff]  }
 0x1b5   :  { %2255 = vmatpush1.bf16.msra.mxu0 %v3859_v36  ;;  %2467 = vmatpush1.bf16.msra.mxu1 %v3862_v38  ;;  %v570_v36 = vadd.bf16 %v544_v25, %v447_v6  ;;  %v3916_v38 = vld [vmem:[#allocation8 + $0x604] ss:$16 sps:$4 sm:$0xff]   ;;  %v3965_v25 = vld [vmem:[#allocation8 + $0x708] ss:$16 sps:$4 sm:$0xff]  }
 0x1b6   :  { %2256 = vmatprep.subr.bf16.mxu0 %v3867_v39  ;;  %2468 = vmatprep.subr.bf16.mxu1 %v3870_v35  ;;  %v3919_v39 = vld [vmem:[#allocation8 + $0x60c] ss:$16 sps:$4 sm:$0xff]   ;;  %v579_v35 = vadd.bf16 %v4506_v45, %v456_v9  ;;  %v3923_v9 = vld [vmem:[#allocation8 + $0x628] ss:$16 sps:$4 sm:$0xff]   ;;  %v3928_v45 = vld [vmem:[#allocation8 + $0x644] ss:$16 sps:$4 sm:$0xff]  }
 0x1b9   :  { %2257 = vmatpush1.bf16.msra.mxu0 %v3865_v41  ;;  %2469 = vmatpush1.bf16.msra.mxu1 %v3868_v54  ;;  %v560_v41 = vpack.i.b16 %v509_v29, %v509_v29  ;;  %v3917_v54 = vld [vmem:[#allocation8 + $0x608] ss:$16 sps:$4 sm:$0xff]   ;;  %v3968_v29 = vld [vmem:[#allocation8 + $0x720] ss:$16 sps:$4 sm:$0xff]  }
 0x1ba   :  { %2258 = vmatprep.subr.bf16.mxu0 %v3873_v34  ;;  %2470 = vmatprep.subr.bf16.mxu1 %v3876_v59  ;;  %v586_v34 = vmax.bf16 %v4226_v0, %v570_v36  ;;  %v595_v59 = vmax.bf16 %v4226_v0, %v579_v35  ;;  %v3979_v36 = vld [vmem:[#allocation8 + $0x74c] ss:$16 sps:$4 sm:$0xff]   ;;  %v3982_v35 = vld [vmem:[#allocation8 + $0x764] ss:$16 sps:$4 sm:$0xff]  }
 0x1bb   :  { %v4535_v6 = vrot.slane %v560_v41, %v4402_v50  ;;  %v3985_v41 = vld [vmem:[#allocation8 + $0x76c] ss:$16 sps:$4 sm:$0xff]  }
 0x1bd   :  { %2259 = vmatpush1.bf16.msra.mxu0 %v3871_v3  ;;  %2471 = vmatpush1.bf16.msra.mxu1 %v3874_v46  ;;  %v3931_v3 = vld [vmem:[#allocation8 + $0x64c] ss:$16 sps:$4 sm:$0xff]   ;;  %v573_v46 = vadd.bf16 %v4535_v6, %v450_v22  ;;  %v3940_v22 = vld [vmem:[#allocation8 + $0x684] ss:$16 sps:$4 sm:$0xff]  }
 0x1be   :  { %2260 = vmatprep.subr.bf16.mxu0 %v3879_v48  ;;  %2472 = vmatprep.subr.bf16.mxu1 %v3882_v52  ;;  %v594_v48 = vmax.bf16 %v4226_v0, %v578_v55  ;;  %v3937_v52 = vld [vmem:[#allocation8 + $0x66c] ss:$16 sps:$4 sm:$0xff]   ;;  %v507_v55 = vcombine.high %v4519_v12, %v4519_v12  ;;  %v4006_v12 = vld [vmem:[#allocation8 + $0x7e4] ss:$16 sps:$4 sm:$0xff]  }
 0x1c1   :  { %2261 = vmatpush1.bf16.msra.mxu0 %v3877_v53  ;;  %2473 = vmatpush1.bf16.msra.mxu1 %v3880_v62  ;;  %v589_v53 = vmax.bf16 %v4226_v0, %v573_v46  ;;  %v3943_v62 = vld [vmem:[#allocation8 + $0x68c] ss:$16 sps:$4 sm:$0xff]   ;;  %v553_v46 = vpack.i.b16 %v507_v55, %v507_v55 }
 0x1c2   :  { %2262 = vmatprep.subr.bf16.mxu0 %v3885_v2  ;;  %2474 = vmatprep.subr.bf16.mxu1 %v3888_v5  ;;  %v3938_v2 = vld [vmem:[#allocation8 + $0x680] ss:$16 sps:$4 sm:$0xff]   ;;  %v3941_v5 = vld [vmem:[#allocation8 + $0x688] ss:$16 sps:$4 sm:$0xff]  }
 0x1c5   :  { %2263 = vmatpush1.bf16.msra.mxu0 %v3883_v49  ;;  %2475 = vmatpush1.bf16.msra.mxu1 %v3886_v56  ;;  %v3946_v49 = vld [vmem:[#allocation8 + $0x6a4] ss:$16 sps:$4 sm:$0xff]   ;;  %v3949_v56 = vld [vmem:[#allocation8 + $0x6ac] ss:$16 sps:$4 sm:$0xff]  }
 0x1c6   :  { %2264 = vmatprep.subr.bf16.mxu0 %v3891_v58  ;;  %2476 = vmatprep.subr.bf16.mxu1 %v3894_v10  ;;  %v3944_v58 = vld [vmem:[#allocation8 + $0x6a0] ss:$16 sps:$4 sm:$0xff]   ;;  %v3947_v10 = vld [vmem:[#allocation8 + $0x6a8] ss:$16 sps:$4 sm:$0xff]  }
 0x1c9   :  { %2265 = vmatpush1.bf16.msra.mxu0 %v3889_v11  ;;  %2477 = vmatpush1.bf16.msra.mxu1 %v3892_v44  ;;  %v3952_v11 = vld [vmem:[#allocation8 + $0x6c4] ss:$16 sps:$4 sm:$0xff]   ;;  %v3955_v44 = vld [vmem:[#allocation8 + $0x6cc] ss:$16 sps:$4 sm:$0xff]  }
 0x1ca   :  { %2266 = vmatprep.subr.bf16.mxu0 %v3897_v63  ;;  %2478 = vmatprep.subr.bf16.mxu1 %v3900_v7  ;;  %v3950_v63 = vld [vmem:[#allocation8 + $0x6c0] ss:$16 sps:$4 sm:$0xff]   ;;  %v3953_v7 = vld [vmem:[#allocation8 + $0x6c8] ss:$16 sps:$4 sm:$0xff]  }
 0x1cd   :  { %2267 = vmatpush1.bf16.msra.mxu0 %v3895_v14  ;;  %2479 = vmatpush1.bf16.msra.mxu1 %v3898_v15  ;;  %v3958_v14 = vld [vmem:[#allocation8 + $0x6e4] ss:$16 sps:$4 sm:$0xff]   ;;  %v3961_v15 = vld [vmem:[#allocation8 + $0x6ec] ss:$16 sps:$4 sm:$0xff]  }
 0x1ce   :  { %2268 = vmatprep.subr.bf16.mxu0 %v3904_v21  ;;  %2480 = vmatprep.subr.bf16.mxu1 %v3907_v23  ;;  %v3959_v21 = vld [vmem:[#allocation8 + $0x6e8] ss:$16 sps:$4 sm:$0xff]   ;;  %v3964_v23 = vld [vmem:[#allocation8 + $0x704] ss:$16 sps:$4 sm:$0xff]  }
 0x1d1   :  { %2269 = vmatpush1.bf16.msra.mxu0 %v3902_v47  ;;  %2481 = vmatpush1.bf16.msra.mxu1 %v3905_v24  ;;  %v3967_v47 = vld [vmem:[#allocation8 + $0x70c] ss:$16 sps:$4 sm:$0xff]   ;;  %v3962_v24 = vld [vmem:[#allocation8 + $0x700] ss:$16 sps:$4 sm:$0xff]  }
 0x1d2   :  { %2270 = vmatprep.subr.bf16.mxu0 %v3910_v8  ;;  %2482 = vmatprep.subr.bf16.mxu1 %v3913_v27  ;;  %v3970_v8 = vld [vmem:[#allocation8 + $0x724] ss:$16 sps:$4 sm:$0xff]   ;;  %v3973_v27 = vld [vmem:[#allocation8 + $0x72c] ss:$16 sps:$4 sm:$0xff]  }
 0x1d5   :  { %2271 = vmatpush1.bf16.msra.mxu0 %v3908_v31  ;;  %2483 = vmatpush1.bf16.msra.mxu1 %v3911_v32  ;;  %v3971_v31 = vld [vmem:[#allocation8 + $0x728] ss:$16 sps:$4 sm:$0xff]   ;;  %v3976_v32 = vld [vmem:[#allocation8 + $0x744] ss:$16 sps:$4 sm:$0xff]  }
 0x1d6   :  { %2293 = vmatprep.subr.bf16.mxu0 %v3916_v38  ;;  %2505 = vmatprep.subr.bf16.mxu1 %v3919_v39  ;;  %v3974_v38 = vld [vmem:[#allocation8 + $0x740] ss:$16 sps:$4 sm:$0xff]   ;;  %v3977_v39 = vld [vmem:[#allocation8 + $0x748] ss:$16 sps:$4 sm:$0xff]  }
 0x1d8   :  { %2273 = vmatmul.mubr.bf16.vlgmr.msra.gmra.mrb[8].mxu0 %v586_v34  ;;  %2485 = vmatmul.mubr.bf16.vlgmr.msra.gmra.mrb[24].mxu1 %v586_v34  ;;  %v3988_v34 = vld [vmem:[#allocation8 + $0x784] ss:$16 sps:$4 sm:$0xff]  }
 0x1d9   :  { %2294 = vmatpush1.bf16.msra.mxu0 %v3914_v26  ;;  %2506 = vmatpush1.bf16.msra.mxu1 %v3917_v54  ;;  %v3980_v26 = vld [vmem:[#allocation8 + $0x760] ss:$16 sps:$4 sm:$0xff]   ;;  %v3983_v54 = vld [vmem:[#allocation8 + $0x768] ss:$16 sps:$4 sm:$0xff]  }
 0x1da   :  { %2295 = vmatprep.subr.bf16.mxu0 %v3922_v61  ;;  %2507 = vmatprep.subr.bf16.mxu1 %v3925_v1  ;;  %v3991_v61 = vld [vmem:[#allocation8 + $0x78c] ss:$16 sps:$4 sm:$0xff]   ;;  %v3986_v1 = vld [vmem:[#allocation8 + $0x780] ss:$16 sps:$4 sm:$0xff]  }
 0x1db   :  { %2282 = vmatprep.mubr.bf16.mxu0 %v595_v59  ;;  %2494 = vmatprep.mubr.bf16.mxu1 %v595_v59  ;;  %v3989_v59 = vld [vmem:[#allocation8 + $0x788] ss:$16 sps:$4 sm:$0xff]  }
 0x1dd   :  { %2296 = vmatpush1.bf16.msra.mxu0 %v3920_v4  ;;  %2508 = vmatpush1.bf16.msra.mxu1 %v3923_v9  ;;  %v3994_v4 = vld [vmem:[#allocation8 + $0x7a4] ss:$16 sps:$4 sm:$0xff]   ;;  %v3997_v9 = vld [vmem:[#allocation8 + $0x7ac] ss:$16 sps:$4 sm:$0xff]  }
 0x1de   :  { %2297 = vmatprep.subr.bf16.mxu0 %v3928_v45  ;;  %2509 = vmatprep.subr.bf16.mxu1 %v3931_v3  ;;  %v3992_v45 = vld [vmem:[#allocation8 + $0x7a0] ss:$16 sps:$4 sm:$0xff]   ;;  %v3995_v3 = vld [vmem:[#allocation8 + $0x7a8] ss:$16 sps:$4 sm:$0xff]  }
 0x1e0   :  { %2283 = vmatmul.mubr.bf16.gmra.mrb[12].mxu0 %v594_v48  ;;  %2495 = vmatmul.mubr.bf16.gmra.mrb[28].mxu1 %v594_v48  ;;  %v4000_v48 = vld [vmem:[#allocation8 + $0x7c4] ss:$16 sps:$4 sm:$0xff]  }
 0x1e1   :  { %2298 = vmatpush1.bf16.msra.mxu0 %v3926_v51  ;;  %2510 = vmatpush1.bf16.msra.mxu1 %v3929_v57  ;;  %v4003_v51 = vld [vmem:[#allocation8 + $0x7cc] ss:$16 sps:$4 sm:$0xff]   ;;  %v3998_v57 = vld [vmem:[#allocation8 + $0x7c0] ss:$16 sps:$4 sm:$0xff]  }
 0x1e2   :  { %2299 = vmatprep.subr.bf16.mxu0 %v3934_v60  ;;  %2511 = vmatprep.subr.bf16.mxu1 %v3937_v52  ;;  %v4001_v60 = vld [vmem:[#allocation8 + $0x7c8] ss:$16 sps:$4 sm:$0xff]   ;;  %v558_v52 = vrot.slane %v553_v46, %v4402_v50 }
 0x1e3   :  { %2325 = vmatprep.mubr.bf16.mxu0 %v589_v53  ;;  %2537 = vmatprep.mubr.bf16.mxu1 %v589_v53  ;;  %v4009_v53 = vld [vmem:[#allocation8 + $0x7ec] ss:$16 sps:$4 sm:$0xff]  }
 0x1e4   :  { %v580_v13 = vadd.bf16 %v558_v52, %v457_v28  ;;  %v4026_v28 = vld [vmem:[#allocation10 + $0x60] sm:$0xff]  }
 0x1e5   :  { %2300 = vmatpush1.bf16.msra.mxu0 %v3932_v16  ;;  %2512 = vmatpush1.bf16.msra.mxu1 %v3935_v19  ;;  %v4004_v16 = vld [vmem:[#allocation8 + $0x7e0] ss:$16 sps:$4 sm:$0xff]   ;;  %v4007_v19 = vld [vmem:[#allocation8 + $0x7e8] ss:$16 sps:$4 sm:$0xff]  }
 0x1e6   :  { %2301 = vmatprep.subr.bf16.mxu0 %v3940_v22  ;;  %2513 = vmatprep.subr.bf16.mxu1 %v3943_v62  ;;  %v581_v22 = vadd.bf16 %v4535_v6, %v458_v42  ;;  %v572_v62 = vadd.bf16 %v558_v52, %v449_v18  ;;  %v4015_v42 = vld [vmem:[#allocation10 + $0xc8] sm:$0xff]   ;;  %v4018_v6 = vld [vmem:[#allocation10 + $0x50] sm:$0xff]  }
 0x1e7   :  { %v4017_v18 = vld [vmem:[#allocation10 + $0x88] sm:$0xff]  }
 0x1e9   :  { %2302 = vmatpush1.bf16.msra.mxu0 %v3938_v2  ;;  %2514 = vmatpush1.bf16.msra.mxu1 %v3941_v5  ;;  %v4010_v2 = vld [vmem:[#allocation10 + $0x40] sm:$0xff]  }
 0x1ea   :  { %2303 = vmatprep.subr.bf16.mxu0 %v3946_v49  ;;  %2515 = vmatprep.subr.bf16.mxu1 %v3949_v56  ;;  %v4011_v5 = vld [vmem:[#allocation10 + $0xc0] sm:$0xff]   ;;  %v597_v49 = vmax.bf16 %v4226_v0, %v581_v22  ;;  %v588_v56 = vmax.bf16 %v4226_v0, %v572_v62 }
 0x1ed   :  { %2304 = vmatpush1.bf16.msra.mxu0 %v3944_v58  ;;  %2516 = vmatpush1.bf16.msra.mxu1 %v3947_v10  ;;  %v4012_v58 = vld [vmem:[#allocation10] sm:$0xff]   ;;  %v4019_v10 = vld [vmem:[#allocation10 + $0xd0] sm:$0xff]  }
 0x1ee   :  { %2305 = vmatprep.subr.bf16.mxu0 %v3952_v11  ;;  %2517 = vmatprep.subr.bf16.mxu1 %v3955_v44  ;;  %v596_v11 = vmax.bf16 %v4226_v0, %v580_v13  ;;  %v4020_v44 = vld [vmem:[#allocation10 + $0x10] sm:$0xff]  }
 0x1f1   :  { %2306 = vmatpush1.bf16.msra.mxu0 %v3950_v63  ;;  %2518 = vmatpush1.bf16.msra.mxu1 %v3953_v7  ;;  %v4021_v63 = vld [vmem:[#allocation10 + $0x90] sm:$0xff]   ;;  %v4022_v7 = vld [vmem:[#allocation10 + $0x58] sm:$0xff]  }
 0x1f2   :  { %2307 = vmatprep.subr.bf16.mxu0 %v3958_v14  ;;  %2519 = vmatprep.subr.bf16.mxu1 %v3961_v15  ;;  %v4023_v14 = vld [vmem:[#allocation10 + $0xd8] sm:$0xff]   ;;  %v4027_v15 = vld [vmem:[#allocation10 + $0xe0] sm:$0xff]  }
 0x1f5   :  { %2308 = vmatpush1.bf16.msra.mxu0 %v3956_v20  ;;  %2520 = vmatpush1.bf16.msra.mxu1 %v3959_v21  ;;  %v4028_v20 = vld [vmem:[#allocation10 + $0x20] sm:$0xff]  }
 0x1f6   :  { %2309 = vmatprep.subr.bf16.mxu0 %v3964_v23  ;;  %2521 = vmatprep.subr.bf16.mxu1 %v3967_v47  ;;  %v4029_v21 = vld [vmem:[#allocation10 + $0xa0] sm:$0xff]   ;;  %v4030_v23 = vld [vmem:[#allocation10 + $0x68] sm:$0xff]  }
 0x1f7   :  { %v4031_v47 = vld [vmem:[#allocation10 + $0xe8] sm:$0xff]  }
 0x1f9   :  { %2310 = vmatpush1.bf16.msra.mxu0 %v3962_v24  ;;  %2522 = vmatpush1.bf16.msra.mxu1 %v3965_v25  ;;  %v4032_v24 = vld [vmem:[#allocation10 + $0x28] sm:$0xff]  }
 0x1fa   :  { %2311 = vmatprep.subr.bf16.mxu0 %v3970_v8  ;;  %2523 = vmatprep.subr.bf16.mxu1 %v3973_v27  ;;  %v4033_v25 = vld [vmem:[#allocation10 + $0xa8] sm:$0xff]   ;;  %v4034_v8 = vld [vmem:[#allocation10 + $0x70] sm:$0xff]  }
 0x1fb   :  { %v4035_v27 = vld [vmem:[#allocation10 + $0xf0] sm:$0xff]  }
 0x1fd   :  { %2312 = vmatpush1.bf16.msra.mxu0 %v3968_v29  ;;  %2524 = vmatpush1.bf16.msra.mxu1 %v3971_v31  ;;  %v4036_v29 = vld [vmem:[#allocation10 + $0x30] sm:$0xff]  }
 0x1fe   :  { %2313 = vmatprep.subr.bf16.mxu0 %v3976_v32  ;;  %2525 = vmatprep.subr.bf16.mxu1 %v3979_v36  ;;  %v4037_v31 = vld [vmem:[#allocation10 + $0xb0] sm:$0xff]   ;;  %v4038_v32 = vld [vmem:[#allocation10 + $0x78] sm:$0xff]  }
 0x1ff   :  { %v4039_v36 = vld [vmem:[#allocation10 + $0xf8] sm:$0xff]  }
 0x201   :  { %2314 = vmatpush1.bf16.msra.mxu0 %v3974_v38  ;;  %2526 = vmatpush1.bf16.msra.mxu1 %v3977_v39  ;;  %v4040_v38 = vld [vmem:[#allocation10 + $0x38] sm:$0xff]  }
 0x202   :  { %2315 = vmatprep.subr.bf16.mxu0 %v3982_v35  ;;  %2527 = vmatprep.subr.bf16.mxu1 %v3985_v41  ;;  %v4041_v39 = vld [vmem:[#allocation10 + $0xb8] sm:$0xff]   ;;  %v4042_v35 = vld [vmem:[#allocation11] sm:$0xff]   ;;  %v3430_v41 = vld.sshfl [vmem:[%s4605_s4] sm:$0x33 pattern:$0x75316420] }
 0x205   :  { %2316 = vmatpush1.bf16.msra.mxu0 %v3980_v26  ;;  %2528 = vmatpush1.bf16.msra.mxu1 %v3983_v54  ;;  %v2575_v26 = vcombine.high %v3430_v41, %v3430_v41  ;;  %v2582_v54 = vrot.slane %v3430_v41, %v4390_v43 }
 0x206   :  { %2317 = vmatprep.subr.bf16.mxu0 %v3988_v34  ;;  %2529 = vmatprep.subr.bf16.mxu1 %v3991_v61 }
 0x207   :  { %v2589_v34 = vrot.slane %v2575_v26, %v4390_v43  ;;  %v2590_v61 = vcombine.high %v2582_v54, %v2582_v54 }
 0x209   :  { %2318 = vmatpush1.bf16.msra.mxu0 %v3986_v1  ;;  %2530 = vmatpush1.bf16.msra.mxu1 %v3989_v59  ;;  %v2591_v1 = vcombine.high %v2589_v34, %v2589_v34  ;;  %v2593_v59 = vpack.i.b16 %v2582_v54, %v2582_v54  ;;  %v2607_v55 = vpack.i.b16 %v2590_v61, %v2590_v61 }
 0x20a   :  { %2319 = vmatprep.subr.bf16.mxu0 %v3994_v4  ;;  %2531 = vmatprep.subr.bf16.mxu1 %v3997_v9  ;;  %v2600_v4 = vpack.i.b16 %v2589_v34, %v2589_v34 }
 0x20b   :  { %v2614_v9 = vpack.i.b16 %v2591_v1, %v2591_v1 }
 0x20d   :  { %2320 = vmatpush1.bf16.msra.mxu0 %v3992_v45  ;;  %2532 = vmatpush1.bf16.msra.mxu1 %v3995_v3  ;;  %v2619_v43 = vrot.slane %v2614_v9, %v4402_v50 }
 0x20e   :  { %2321 = vmatprep.subr.bf16.mxu0 %v4000_v48  ;;  %2533 = vmatprep.subr.bf16.mxu1 %v4003_v51  ;;  %v2598_v51 = vrot.slane %v2593_v59, %v4402_v50 }
 0x211   :  { %2322 = vmatpush1.bf16.msra.mxu0 %v3998_v57  ;;  %2534 = vmatpush1.bf16.msra.mxu1 %v4001_v60  ;;  %v2612_v57 = vrot.slane %v2607_v55, %v4402_v50 }
 0x212   :  { %2323 = vmatprep.subr.bf16.mxu0 %v4006_v12  ;;  %2535 = vmatprep.subr.bf16.mxu1 %v4009_v53  ;;  %v2605_v12 = vrot.slane %v2600_v4, %v4402_v50 }
 0x215   :  { %2324 = vmatpush1.bf16.msra.mxu0 %v4004_v16  ;;  %2536 = vmatpush1.bf16.msra.mxu1 %v4007_v19 }
 0x216   :  { %3472 = vmatprep.subr.bf16.mxu0 %v4010_v2  ;;  %3500 = vmatprep.subr.bf16.mxu1 %v4011_v5 }
 0x218   :  { %2326 = vmatmul.mubr.bf16.vlgmr.msra.gmra.mrb[8].mxu0 %v588_v56  ;;  %2538 = vmatmul.mubr.bf16.vlgmr.msra.gmra.mrb[24].mxu1 %v588_v56 }
 0x219   :  { %2335 = vmatprep.mubr.bf16.mxu0 %v597_v49  ;;  %2547 = vmatprep.mubr.bf16.mxu1 %v597_v49 }
 0x21a   :  { %3473 = vmatpush3.bf16.msra.mxu0 %v4012_v58  ;;  %3501 = vmatpush3.bf16.msra.mxu1 %v4013_v37 }
 0x21b   :  { %3474 = vmatprep.subr.bf16.mxu0 %v4014_v33  ;;  %3502 = vmatprep.subr.bf16.mxu1 %v4015_v42 }
 0x21e   :  { %3475 = vmatpush3.bf16.msra.mxu0 %v4016_v17  ;;  %3503 = vmatpush3.bf16.msra.mxu1 %v4017_v18 }
 0x21f   :  { %3476 = vmatprep.subr.bf16.mxu0 %v4018_v6  ;;  %3504 = vmatprep.subr.bf16.mxu1 %v4019_v10 }
 0x220   :  { %2336 = vmatmul.mubr.bf16.gmra.mrb[12].mxu0 %v596_v11  ;;  %2548 = vmatmul.mubr.bf16.gmra.mrb[28].mxu1 %v596_v11  ;;  %v4043_v11 = vld [vmem:[#allocation11 + $0x8] sm:$0xff]  }
 0x222   :  { %3477 = vmatpush3.bf16.msra.mxu0 %v4020_v44  ;;  %3505 = vmatpush3.bf16.msra.mxu1 %v4021_v63 }
 0x223   :  { %3478 = vmatprep.subr.bf16.mxu0 %v4022_v7  ;;  %3506 = vmatprep.subr.bf16.mxu1 %v4023_v14 }
 0x226   :  { %3479 = vmatpush3.bf16.msra.mxu0 %v4024_v30  ;;  %3507 = vmatpush3.bf16.msra.mxu1 %v4025_v40 }
 0x227   :  { %3480 = vmatprep.subr.bf16.mxu0 %v4026_v28  ;;  %3508 = vmatprep.subr.bf16.mxu1 %v4027_v15 }
 0x22a   :  { %3481 = vmatpush3.bf16.msra.mxu0 %v4028_v20  ;;  %3509 = vmatpush3.bf16.msra.mxu1 %v4029_v21 }
 0x22b   :  { %3482 = vmatprep.subr.bf16.mxu0 %v4030_v23  ;;  %3510 = vmatprep.subr.bf16.mxu1 %v4031_v47  ;;  %v4044_v23 = vld [vmem:[#allocation11 + $0x10] sm:$0xff]  }
 0x22e   :  { %3483 = vmatpush3.bf16.msra.mxu0 %v4032_v24  ;;  %3511 = vmatpush3.bf16.msra.mxu1 %v4033_v25 }
 0x22f   :  { %3484 = vmatprep.subr.bf16.mxu0 %v4034_v8  ;;  %3512 = vmatprep.subr.bf16.mxu1 %v4035_v27 }
 0x232   :  { %3485 = vmatpush3.bf16.msra.mxu0 %v4036_v29  ;;  %3513 = vmatpush3.bf16.msra.mxu1 %v4037_v31  ;;  %v4045_v31 = vld [vmem:[#allocation11 + $0x18] sm:$0xff]  }
 0x233   :  { %3486 = vmatprep.subr.bf16.mxu0 %v4038_v32  ;;  %3514 = vmatprep.subr.bf16.mxu1 %v4039_v36  ;;  %v4046_v32 = vld [vmem:[#allocation11 + $0x20] sm:$0xff]   ;;  %v4047_v36 = vld [vmem:[#allocation11 + $0x28] sm:$0xff]  }
 0x236   :  { %3487 = vmatpush3.bf16.msra.mxu0 %v4040_v38  ;;  %3515 = vmatpush3.bf16.msra.mxu1 %v4041_v39  ;;  %v4048_v38 = vld [vmem:[#allocation11 + $0x30] sm:$0xff]   ;;  %v4049_v39 = vld [vmem:[#allocation11 + $0x38] sm:$0xff]  }
 0x237   :  { %3538 = vmatprep.subr.bf16.mxu0 %v4042_v35 }
 0x2eb   :  { %v2327_v45 = vpop.f32.mrb[8].mxu0  ;;  %v2539_v3 = vpop.f32.mrb[24].mxu1 }
 0x2ec   :  { %v2329_v46 = vpop.f32.mrb[9].mxu0  ;;  %v2541_v48 = vpop.f32.mrb[25].mxu1 }
 0x2ed   :  { %v2331_v60 = vpop.f32.mrb[10].mxu0  ;;  %v2543_v52 = vpop.f32.mrb[26].mxu1 }
 0x2ee   :  { %v2558_v53 = vpack.c.bf16 %v2331_v60, %v2327_v45  ;;  %v2560_v16 = vpack.c.bf16 %v2543_v52, %v2539_v3  ;;  %v2333_v19 = vpop.f32.mrb[11].mxu0  ;;  %v2545_v22 = vpop.f32.mrb[27].mxu1 }
 0x2ef   :  { %v2559_v62 = vpack.c.bf16 %v2333_v19, %v2329_v46  ;;  %v2561_v2 = vpack.c.bf16 %v2545_v22, %v2541_v48 }
 0x2f0   :  { %v2620_v5 = vadd.bf16 %v2598_v51, %v2558_v53  ;;  %v2622_v49 = vadd.bf16 %v2612_v57, %v2560_v16 }
 0x2f1   :  { %v2621_v56 = vadd.bf16 %v2605_v12, %v2559_v62  ;;  %v2623_v58 = vadd.bf16 %v2619_v43, %v2561_v2 }
 0x2f2   :  { %v2628_v17 = vmax.bf16 %v4226_v0, %v2620_v5  ;;  %v2630_v18 = vmax.bf16 %v4226_v0, %v2622_v49 }
 0x2f3   :  { %v2337_v37 = vpop.f32.mrb[12].mxu0  ;;  %v2549_v33 = vpop.f32.mrb[28].mxu1  ;;  %v2629_v42 = vmax.bf16 %v4226_v0, %v2621_v56  ;;  %v2631_v13 = vmax.bf16 %v4226_v0, %v2623_v58 }
 0x2f4   :  { %v2339_v6 = vpop.f32.mrb[13].mxu0  ;;  %v2551_v10 = vpop.f32.mrb[29].mxu1 }
 0x2f5   :  { %v2341_v44 = vpop.f32.mrb[14].mxu0  ;;  %v2553_v63 = vpop.f32.mrb[30].mxu1  ;;  %2924 = vmatprep.mubr.bf16.mxu0 %v2629_v42  ;;  %2973 = vmatprep.mubr.bf16.mxu1 %v2631_v13 }
 0x2f6   :  { %v2562_v7 = vpack.c.bf16 %v2341_v44, %v2337_v37  ;;  %v2564_v14 = vpack.c.bf16 %v2553_v63, %v2549_v33  ;;  %v2343_v30 = vpop.f32.mrb[15].mxu0  ;;  %v2555_v40 = vpop.f32.mrb[31].mxu1  ;;  %2925 = vmatmul.mubr.bf16.vlgmr.msra.gmra.mrb[16].mxu0 %v2628_v17  ;;  %2974 = vmatmul.mubr.bf16.vlgmr.msra.gmra.mrb[32].mxu1 %v2630_v18  ;;  %v3463_v18 = vld [vmem:[%s4609_s8] ss:$0 sm:$0xff] }
 0x2f7   :  { %v2563_v28 = vpack.c.bf16 %v2343_v30, %v2339_v6  ;;  %v2565_v15 = vpack.c.bf16 %v2555_v40, %v2551_v10  ;;  %3539 = vmatpush3.bf16.msra.mxu0 %v4042_v35  ;;  %v2992_v35 = vld [vmem:[%s4607_s6] sm:$0x1] }
 0x2f8   :  { %v2624_v20 = vadd.bf16 %v2598_v51, %v2562_v7  ;;  %v2626_v21 = vadd.bf16 %v2612_v57, %v2564_v14  ;;  %3540 = vmatprep.subr.bf16.mxu0 %v4043_v11  ;;  %v2994_v4 = vpack.i.b16 %v2992_v35, %v2992_v35 }
 0x2f9   :  { %v2625_v47 = vadd.bf16 %v2605_v12, %v2563_v28  ;;  %v2627_v24 = vadd.bf16 %v2619_v43, %v2565_v15 }
 0x2fa   :  { %v2632_v27 = vmax.bf16 %v4226_v0, %v2624_v20  ;;  %v2634_v29 = vmax.bf16 %v4226_v0, %v2626_v21  ;;  %v2999_v57 = vrot.slane %v2994_v4, %v4402_v50 }
 0x2fb   :  { %v2633_v25 = vmax.bf16 %v4226_v0, %v2625_v47  ;;  %v2635_v8 = vmax.bf16 %v4226_v0, %v2627_v24  ;;  %3541 = vmatpush3.bf16.msra.mxu0 %v4043_v11 }
 0x2fc   :  { %3542 = vmatprep.subr.bf16.mxu0 %v4044_v23 }
 0x2fd   :  { %2932 = vmatprep.mubr.bf16.mxu0 %v2633_v25  ;;  %2981 = vmatprep.mubr.bf16.mxu1 %v2635_v8 }
 0x2fe   :  { %2933 = vmatmul.mubr.bf16.gmra.mrb[20].mxu0 %v2632_v27  ;;  %2982 = vmatmul.mubr.bf16.gmra.mrb[36].mxu1 %v2634_v29 }
 0x2ff   :  { %3543 = vmatpush3.bf16.msra.mxu0 %v4044_v23 }
 0x300   :  { %3544 = vmatprep.subr.bf16.mxu0 %v4045_v31 }
 0x303   :  { %3545 = vmatpush3.bf16.msra.mxu0 %v4045_v31 }
 0x304   :  { %3546 = vmatprep.subr.bf16.mxu0 %v4046_v32 }
 0x307   :  { %3547 = vmatpush3.bf16.msra.mxu0 %v4046_v32 }
 0x308   :  { %3548 = vmatprep.subr.bf16.mxu0 %v4047_v36 }
 0x30b   :  { %3549 = vmatpush3.bf16.msra.mxu0 %v4047_v36 }
 0x30c   :  { %3550 = vmatprep.subr.bf16.mxu0 %v4048_v38 }
 0x30f   :  { %3551 = vmatpush3.bf16.msra.mxu0 %v4048_v38 }
 0x310   :  { %3552 = vmatprep.subr.bf16.mxu0 %v4049_v39 }
 0x313   :  { %3553 = vmatpush3.bf16.msra.mxu0 %v4049_v39 }
 0x3c9   :  { %v3488_v41 = vpop.f32.mrb[16].mxu0  ;;  %v3516_v26 = vpop.f32.mrb[32].mxu1 }
 0x3ca   :  { %v3489_v54 = vpop.f32.mrb[17].mxu0  ;;  %v3517_v34 = vpop.f32.mrb[33].mxu1 }
 0x3cb   :  { %v3490_v61 = vadd.f32 %v3489_v54, %v3488_v41  ;;  %v3518_v1 = vadd.f32 %v3517_v34, %v3516_v26  ;;  %v3491_v59 = vpop.f32.mrb[18].mxu0  ;;  %v3519_v55 = vpop.f32.mrb[34].mxu1 }
 0x3cc   :  { %v3492_v9 = vpop.f32.mrb[19].mxu0  ;;  %v3520_v45 = vpop.f32.mrb[35].mxu1 }
 0x3cd   :  { %v2976_v3 = vadd.f32 %v3518_v1, %v3490_v61  ;;  %v3493_v46 = vadd.f32 %v3492_v9, %v3491_v59  ;;  %v3521_v48 = vadd.f32 %v3520_v45, %v3519_v55 }
 0x3cf   :  { %v2979_v51 = vadd.f32 %v3521_v48, %v3493_v46 }
 0x3d1   :  { %v2990_v60 = vpack.c.bf16 %v2979_v51, %v2976_v3  ;;  %v3494_v52 = vpop.f32.mrb[20].mxu0  ;;  %v3522_v12 = vpop.f32.mrb[36].mxu1 }
 0x3d2   :  { %v3495_v43 = vpop.f32.mrb[21].mxu0  ;;  %v3523_v53 = vpop.f32.mrb[37].mxu1 }
 0x3d3   :  { %v3496_v16 = vadd.f32 %v3495_v43, %v3494_v52  ;;  %v3524_v19 = vadd.f32 %v3523_v53, %v3522_v12  ;;  %v3497_v22 = vpop.f32.mrb[22].mxu0  ;;  %v3525_v62 = vpop.f32.mrb[38].mxu1  ;;  %v3000_v2 = vadd.bf16 %v2999_v57, %v2990_v60 }
 0x3d4   :  { %v3498_v5 = vpop.f32.mrb[23].mxu0  ;;  %v3526_v49 = vpop.f32.mrb[39].mxu1 }
 0x3d5   :  { %v2984_v56 = vadd.f32 %v3524_v19, %v3496_v16  ;;  %v3499_v58 = vadd.f32 %v3498_v5, %v3497_v22  ;;  %v3527_v37 = vadd.f32 %v3526_v49, %v3525_v62  ;;  %v3002_v33 = vmax.bf16 %v4226_v0, %v3000_v2 }
 0x3d7   :  { %v2987_v42 = vadd.f32 %v3527_v37, %v3499_v58  ;;  %3554 = vmatprep.mubr.bf16.mxu0 %v3002_v33 }
 0x3d9   :  { %v2991_v50 = vpack.c.bf16 %v2987_v42, %v2984_v56 }
 0x3db   :  { %v3001_v13 = vadd.bf16 %v2999_v57, %v2991_v50 }
 0x3dd   :  { %v3003_v17 = vmax.bf16 %v4226_v0, %v3001_v13 }
 0x3df   :  { %3555 = vmatmul.mubr.bf16.vlgmr.msra.gmra.mrb[24].mxu0 %v3003_v17 }
 0x4b2   :  { %v3556_v6 = vpop.f32.mrb[24].mxu0 }
 0x4b3   :  { %v3118_v10 = vadd.f32 %v3556_v6, %v3463_v18  ;;  %v3109_v11 = vpop.f32.mrb[25].mxu0 }
 0x4b4   :  { %v3110_v44 = vadd.f32 %v3463_v18, %v3109_v11  ;;  %v3557_v63 = vpop.f32.mrb[26].mxu0 }
 0x4b5   :  { %3126 = vst [vmem:[#allocation13 + $0x10] sm:$0xff] %v3118_v10  ;;  %v3121_v7 = vadd.f32 %v3557_v63, %v3463_v18  ;;  %v3112_v14 = vpop.f32.mrb[27].mxu0 }
 0x4b6   :  { %3124 = vst [vmem:[#allocation13] sm:$0xff] %v3110_v44  ;;  %v3113_v30 = vadd.f32 %v3463_v18, %v3112_v14 }
 0x4b7   :  { %3127 = vst [vmem:[#allocation13 + $0x18] sm:$0xff] %v3121_v7 }
 0x4b8   :  { %3125 = vst [vmem:[#allocation13 + $0x8] sm:$0xff] %v3113_v30 }
 0x4b9   :  { %4193 = shalt.err (!%p4190_p10)
}
 0x4ba   :  { %s4194_s22 = scalar_lea.hbm %s4610_s9, 512 }
 0x4bb   :  { %p4195_p11 = scmp.ne.s32.totalorder %s4610_s9, %s4194_s22  ;;  %p4198_p12 = scmp.lt.u32.totalorder %s4194_s22, %s4610_s9 }
 0x4bd   :  { %p4200_p13 = pnand %p4198_p12, %p4195_p11 }
 0x4bf   :  { %4203 = shalt.err (!%p4200_p13)
}
 0x4c0   :  { %s4229_s2 = smov 128   ;;  %s4230_s28 = smov 8  }
 0x4c1   :  { %3139 = dma.vmem_to_hbm [thread:$0]  %s3134_s19, 512, %s4610_s9, [#allocation4], %s4229_s2, %s4229_s2, %s4230_s28  }
 0x4c2   :  { %4212 = dma.done.wait [#allocation4], 512  }
 0x4c3   :  { %4213 = vsyncadd [#allocation4], 4294966784 }
 0x4c4   :  { %3143 = vsyncpa [#allocation3], 1 }
 0x4c5   :  { %3144 = vsyncpa [#allocation6], 1 }
 0x4c6   :  { %3145 = vsyncpa [#allocation9], 1 }
 0x4c7   :  { %3146 = vsyncpa [#allocation12], 1 }
 0x4c8   :  { %3147 = vsyncpa [#allocation4], 1 }

</bundles_post_ra>
